<compile_context>
chip_gen: v6e
topology: v6e:2x2x1
jax: 0.10.0
libtpu: 0.0.40
codegen_flags: <defaults>
</compile_context>

<pallas_src>
import jax
import jax.numpy as jnp
from jax.experimental import pallas as pl
from jax.experimental.pallas import tpu as pltpu

INPUT_SIZE = 1000
HIDDEN_SIZE = 500
OUTPUT_SIZE = 10

# Lane-aligned (multiple of 128) padded *output* feature dims.
HIDDEN_PAD = 512
OUTPUT_PAD = 128


def _round_up(n: int, m: int) -> int:
    return ((n + m - 1) // m) * m


def mlp_kernel(x_ref, w1_ref, b1_ref, w2_ref, b2_ref, w3_ref, b3_ref, o_ref):
    """Fused 3-layer MLP on one batch tile.

    x_ref:  (block_batch, INPUT_SIZE)  float32 (raw input; cast in-kernel)
    wN_ref: (in, out_pad)              compute dtype (bf16 or f32), pre-transposed
    bN_ref: (1, out_pad)               float32
    o_ref:  (block_batch, OUTPUT_PAD)  float32
    All matmuls accumulate in f32; bias-add and ReLU stay in f32 on the VPU;
    ReLU + downcast to the compute dtype are fused into one expression so only
    the narrow intermediate is materialized.
    """
    x = x_ref[...].astype(w1_ref.dtype)  # cast f32 -> compute dtype in VMEM

    h = jnp.dot(x, w1_ref[...], preferred_element_type=jnp.float32)
    h = jnp.maximum(h + b1_ref[...], 0.0).astype(w2_ref.dtype)

    h = jnp.dot(h, w2_ref[...], preferred_element_type=jnp.float32)
    h = jnp.maximum(h + b2_ref[...], 0.0).astype(w3_ref.dtype)

    out = jnp.dot(h, w3_ref[...], preferred_element_type=jnp.float32)
    o_ref[...] = (out + b3_ref[...]).astype(o_ref.dtype)


def prepare_params(params, compute_dtype=jnp.bfloat16):
    """One-time prep: transpose to (in, out), zero-pad output dims, cast.

    Done once at init so the per-call wrapper does no weight reshuffling.
    Zero pads keep the math exact: padded hidden units see zero weight
    columns/rows and zero bias, so ReLU(0) = 0 contributes nothing downstream.
    bf16 is the default compute dtype (fast MXU path on v5e/v6e/v7x);
    accumulation, bias-add and ReLU stay in f32 inside the kernel.
    """
    w1t = jnp.zeros((INPUT_SIZE, HIDDEN_PAD), jnp.float32)
    w1t = w1t.at[:, :HIDDEN_SIZE].set(params["w1"].T)
    w2t = jnp.zeros((HIDDEN_PAD, HIDDEN_PAD), jnp.float32)
    w2t = w2t.at[:HIDDEN_SIZE, :HIDDEN_SIZE].set(params["w2"].T)
    w3t = jnp.zeros((HIDDEN_PAD, OUTPUT_PAD), jnp.float32)
    w3t = w3t.at[:HIDDEN_SIZE, :OUTPUT_SIZE].set(params["w3"].T)

    b1 = jnp.zeros((1, HIDDEN_PAD), jnp.float32).at[0, :HIDDEN_SIZE].set(params["b1"])
    b2 = jnp.zeros((1, HIDDEN_PAD), jnp.float32).at[0, :HIDDEN_SIZE].set(params["b2"])
    b3 = jnp.zeros((1, OUTPUT_PAD), jnp.float32).at[0, :OUTPUT_SIZE].set(params["b3"])

    return {
        "w1t": w1t.astype(compute_dtype),
        "w2t": w2t.astype(compute_dtype),
        "w3t": w3t.astype(compute_dtype),
        "b1": b1,  # biases stay f32 (bias add + ReLU run in f32 on the VPU)
        "b2": b2,
        "b3": b3,
    }


def mlp_forward(x, prepared, *, block_batch=512):
    """x: (B, INPUT_SIZE) float32.  prepared: output of prepare_params()."""
    B = x.shape[0]

    # --- batch tile selection ---------------------------------------------
    # Large tile (default 512) to amortize the ~0.35 us per-grid-step pipeline
    # overhead, but:
    #   * keep >= 2 grid steps when B >= 256 so the "parallel" batch axis can
    #     be sharded across v7x's two TensorCores;
    #   * never exceed the (8-aligned) batch so tiny batches use one exact tile.
    bb = block_batch
    if B >= 256:
        bb = min(bb, _round_up(pl.cdiv(B, 2), 128))
    bb = max(8, min(bb, _round_up(B, 8)))

    grid = (pl.cdiv(B, bb),)

    # Weights/biases get full-array blocks with a constant index_map, so they
    # are fetched once and stay resident in VMEM across the whole batch loop;
    # only the x / out tiles move with the grid.
    full = lambda shape: pl.BlockSpec(shape, lambda i: (0, 0))

    itemsize_w = prepared["w1t"].dtype.itemsize
    w_bytes = (prepared["w1t"].size + prepared["w2t"].size
               + prepared["w3t"].size) * itemsize_w
    b_bytes = (prepared["b1"].size + prepared["b2"].size
               + prepared["b3"].size) * 4
    cost = pl.CostEstimate(
        flops=2 * B * (INPUT_SIZE * HIDDEN_PAD
                       + HIDDEN_PAD * HIDDEN_PAD
                       + HIDDEN_PAD * OUTPUT_PAD),
        transcendentals=0,
        bytes_accessed=B * INPUT_SIZE * 4 + w_bytes + b_bytes
                       + B * OUTPUT_PAD * 4,
    )

    out_p = pl.pallas_call(
        mlp_kernel,
        out_shape=jax.ShapeDtypeStruct((B, OUTPUT_PAD), jnp.float32),
        grid_spec=pltpu.PrefetchScalarGridSpec(
            num_scalar_prefetch=0,
            grid=grid,
            in_specs=[
                pl.BlockSpec((bb, INPUT_SIZE), lambda i: (i, 0)),  # x tile (raw f32)
                full((INPUT_SIZE, HIDDEN_PAD)),    # w1^T (out-dim padded)
                full((1, HIDDEN_PAD)),             # b1
                full((HIDDEN_PAD, HIDDEN_PAD)),    # w2^T
                full((1, HIDDEN_PAD)),             # b2
                full((HIDDEN_PAD, OUTPUT_PAD)),    # w3^T
                full((1, OUTPUT_PAD)),             # b3
            ],
            out_specs=pl.BlockSpec((bb, OUTPUT_PAD), lambda i: (i, 0)),
        ),
        compiler_params=pltpu.CompilerParams(
            # Batch tiles are independent -> shard across TensorCores on v7x.
            dimension_semantics=("parallel",),
            # Lift the v5e 16 MiB scoped-VMEM default; stays within every
            # generation's physical VMEM (v7x: 64 MiB).
            vmem_limit_bytes=32 * 1024 * 1024,
        ),
        cost_estimate=cost,
    )(x, prepared["w1t"], prepared["b1"], prepared["w2t"], prepared["b2"],
      prepared["w3t"], prepared["b3"])

    # Strip output-lane padding (keep f32 to match the nn.Module semantics).
    # Downstream consumers that tolerate the padded slab can skip this slice.
    return out_p[:, :OUTPUT_SIZE]


def init_params(key):
    """Deterministic init mimicking PyTorch nn.Linear default (U[-1/sqrt(fan_in), +])."""
    ks = jax.random.split(key, 6)

    def linear(kw, kb, fan_out, fan_in):
        bound = 1.0 / jnp.sqrt(fan_in)
        w = jax.random.uniform(kw, (fan_out, fan_in), jnp.float32, -bound, bound)
        b = jax.random.uniform(kb, (fan_out,), jnp.float32, -bound, bound)
        return w, b

    w1, b1 = linear(ks[0], ks[1], HIDDEN_SIZE, INPUT_SIZE)
    w2, b2 = linear(ks[2], ks[3], HIDDEN_SIZE, HIDDEN_SIZE)
    w3, b3 = linear(ks[4], ks[5], OUTPUT_SIZE, HIDDEN_SIZE)
    return {"w1": w1, "b1": b1, "w2": w2, "b2": b2, "w3": w3, "b3": b3}


def mlp_reference(x, p):
    h1 = jnp.maximum(x @ p["w1"].T + p["b1"], 0.0)
    h2 = jnp.maximum(h1 @ p["w2"].T + p["b2"], 0.0)
    return h2 @ p["w3"].T + p["b3"]


if __name__ == "__main__":
    key = jax.random.PRNGKey(0)
    k_params, k_x1, k_x2 = jax.random.split(key, 3)
    params = init_params(k_params)

    # --- f32 path, tiny batch (exact-precision check, single-tile grid) ---
    x_small = jax.random.normal(k_x1, (16, INPUT_SIZE), jnp.float32)
    prep_f32 = prepare_params(params, compute_dtype=jnp.float32)
    out_f32 = jax.block_until_ready(mlp_forward(x_small, prep_f32))
    ref_small = jax.block_until_ready(mlp_reference(x_small, params))
    assert out_f32.shape == (16, OUTPUT_SIZE)
    assert jnp.allclose(out_f32, ref_small, atol=1e-4, rtol=1e-4), "f32 mismatch"

    # --- bf16 default path; B=300 exercises grid=(2,) with a masked partial
    #     edge block (checks that garbage edge rows never leak into real rows)
    #     and keeps >= 2 grid steps for v7x's two TensorCores. ---
    x_big = jax.random.normal(k_x2, (300, INPUT_SIZE), jnp.float32)
    prep_bf16 = prepare_params(params)  # bf16 compute dtype by default
    out_bf16 = jax.block_until_ready(mlp_forward(x_big, prep_bf16))
    ref_big = jax.block_until_ready(mlp_reference(x_big, params))
    assert out_bf16.shape == (300, OUTPUT_SIZE)
    rel_err = jnp.max(jnp.abs(out_bf16 - ref_big)) / (jnp.max(jnp.abs(ref_big)) + 1e-6)
    assert rel_err < 3e-2, f"bf16 mismatch, rel_err={rel_err}"

    print("KERNEL_OK")
</pallas_src>

<mosaic_0001>
module attributes {stable_mosaic.version = 11 : i64} {
  func.func @mlp_kernel(%arg0: i32, %arg1: memref<16x1000xf32, #tpu.memory_space<vmem>>, %arg2: memref<1000x512xf32, #tpu.memory_space<vmem>>, %arg3: memref<1x512xf32, #tpu.memory_space<vmem>>, %arg4: memref<512x512xf32, #tpu.memory_space<vmem>>, %arg5: memref<1x512xf32, #tpu.memory_space<vmem>>, %arg6: memref<512x128xf32, #tpu.memory_space<vmem>>, %arg7: memref<1x128xf32, #tpu.memory_space<vmem>>, %arg8: memref<16x128xf32, #tpu.memory_space<vmem>>) attributes {dimension_semantics = [#tpu.dimension_semantics<parallel>], iteration_bounds = array<i64: 1>, scalar_prefetch = 0 : i64, scratch_operands = 0 : i64, tpu.core_type = #tpu.core_type<tc>, window_params = [{transform_indices = @transform_0, window_bounds = array<i64: 16, 1000>}, {pipeline_mode = #tpu.pipeline_mode<synchronous>, transform_indices = @transform_1, window_bounds = array<i64: 1000, 512>}, {pipeline_mode = #tpu.pipeline_mode<synchronous>, transform_indices = @transform_2, window_bounds = array<i64: 1, 512>}, {pipeline_mode = #tpu.pipeline_mode<synchronous>, transform_indices = @transform_3, window_bounds = array<i64: 512, 512>}, {pipeline_mode = #tpu.pipeline_mode<synchronous>, transform_indices = @transform_4, window_bounds = array<i64: 1, 512>}, {pipeline_mode = #tpu.pipeline_mode<synchronous>, transform_indices = @transform_5, window_bounds = array<i64: 512, 128>}, {pipeline_mode = #tpu.pipeline_mode<synchronous>, transform_indices = @transform_6, window_bounds = array<i64: 1, 128>}, {transform_indices = @transform_7, window_bounds = array<i64: 16, 128>}]} {
    %c0 = arith.constant 0 : index
    %c0_0 = arith.constant 0 : index
    %0 = vector.load %arg1[%c0, %c0_0] : memref<16x1000xf32, #tpu.memory_space<vmem>>, vector<16x1000xf32>
    %c0_1 = arith.constant 0 : index
    %c0_2 = arith.constant 0 : index
    %1 = vector.load %arg2[%c0_1, %c0_2] : memref<1000x512xf32, #tpu.memory_space<vmem>>, vector<1000x512xf32>
    %cst = arith.constant dense<0.000000e+00> : vector<16x512xf32>
    %2 = tpu.matmul %0, %1, %cst {dimension_numbers = #tpu.dot_dimension_numbers<[1], [0], [0], [1], [0, 0, 1, 1], [], []>} : vector<16x1000xf32>, vector<1000x512xf32>, vector<16x512xf32> -> vector<16x512xf32>
    %c0_3 = arith.constant 0 : index
    %c0_4 = arith.constant 0 : index
    %3 = vector.load %arg3[%c0_3, %c0_4] : memref<1x512xf32, #tpu.memory_space<vmem>>, vector<1x512xf32>
    %4 = vector.broadcast %3 : vector<1x512xf32> to vector<16x512xf32>
    %5 = arith.addf %2, %4 : vector<16x512xf32>
    %cst_5 = arith.constant 0.000000e+00 : f32
    %6 = vector.broadcast %cst_5 : f32 to vector<16x512xf32>
    %7 = arith.maximumf %5, %6 : vector<16x512xf32>
    %c0_6 = arith.constant 0 : index
    %c0_7 = arith.constant 0 : index
    %8 = vector.load %arg4[%c0_6, %c0_7] : memref<512x512xf32, #tpu.memory_space<vmem>>, vector<512x512xf32>
    %cst_8 = arith.constant dense<0.000000e+00> : vector<16x512xf32>
    %9 = tpu.matmul %7, %8, %cst_8 {dimension_numbers = #tpu.dot_dimension_numbers<[1], [0], [0], [1], [0, 0, 1, 1], [], []>} : vector<16x512xf32>, vector<512x512xf32>, vector<16x512xf32> -> vector<16x512xf32>
    %c0_9 = arith.constant 0 : index
    %c0_10 = arith.constant 0 : index
    %10 = vector.load %arg5[%c0_9, %c0_10] : memref<1x512xf32, #tpu.memory_space<vmem>>, vector<1x512xf32>
    %11 = vector.broadcast %10 : vector<1x512xf32> to vector<16x512xf32>
    %12 = arith.addf %9, %11 : vector<16x512xf32>
    %cst_11 = arith.constant 0.000000e+00 : f32
    %13 = vector.broadcast %cst_11 : f32 to vector<16x512xf32>
    %14 = arith.maximumf %12, %13 : vector<16x512xf32>
    %c0_12 = arith.constant 0 : index
    %c0_13 = arith.constant 0 : index
    %15 = vector.load %arg6[%c0_12, %c0_13] : memref<512x128xf32, #tpu.memory_space<vmem>>, vector<512x128xf32>
    %cst_14 = arith.constant dense<0.000000e+00> : vector<16x128xf32>
    %16 = tpu.matmul %14, %15, %cst_14 {dimension_numbers = #tpu.dot_dimension_numbers<[1], [0], [0], [1], [0, 0, 1, 1], [], []>} : vector<16x512xf32>, vector<512x128xf32>, vector<16x128xf32> -> vector<16x128xf32>
    %c0_15 = arith.constant 0 : index
    %c0_16 = arith.constant 0 : index
    %17 = vector.load %arg7[%c0_15, %c0_16] : memref<1x128xf32, #tpu.memory_space<vmem>>, vector<1x128xf32>
    %18 = vector.broadcast %17 : vector<1x128xf32> to vector<16x128xf32>
    %19 = arith.addf %16, %18 : vector<16x128xf32>
    %c0_17 = arith.constant 0 : index
    %c0_18 = arith.constant 0 : index
    %20 = vector.load %arg8[%c0_17, %c0_18] : memref<16x128xf32, #tpu.memory_space<vmem>>, vector<16x128xf32>
    tpu.vector_store %arg8[%c0_17, %c0_18], %19 {strides = array<i32>} : memref<16x128xf32, #tpu.memory_space<vmem>>, vector<16x128xf32>,
    return
  }
  func.func @transform_0(%arg0: i32) -> (i32, i32) {
    %c0_i32 = arith.constant 0 : i32
    %c0_i32_0 = arith.constant 0 : i32
    return %arg0, %c0_i32 : i32, i32
  }
  func.func @transform_1(%arg0: i32) -> (i32, i32) {
    %c0_i32 = arith.constant 0 : i32
    %c0_i32_0 = arith.constant 0 : i32
    %c0_i32_1 = arith.constant 0 : i32
    return %c0_i32, %c0_i32_0 : i32, i32
  }
  func.func @transform_2(%arg0: i32) -> (i32, i32) {
    %c0_i32 = arith.constant 0 : i32
    %c0_i32_0 = arith.constant 0 : i32
    %c0_i32_1 = arith.constant 0 : i32
    return %c0_i32, %c0_i32_0 : i32, i32
  }
  func.func @transform_3(%arg0: i32) -> (i32, i32) {
    %c0_i32 = arith.constant 0 : i32
    %c0_i32_0 = arith.constant 0 : i32
    %c0_i32_1 = arith.constant 0 : i32
    return %c0_i32, %c0_i32_0 : i32, i32
  }
  func.func @transform_4(%arg0: i32) -> (i32, i32) {
    %c0_i32 = arith.constant 0 : i32
    %c0_i32_0 = arith.constant 0 : i32
    %c0_i32_1 = arith.constant 0 : i32
    return %c0_i32, %c0_i32_0 : i32, i32
  }
  func.func @transform_5(%arg0: i32) -> (i32, i32) {
    %c0_i32 = arith.constant 0 : i32
    %c0_i32_0 = arith.constant 0 : i32
    %c0_i32_1 = arith.constant 0 : i32
    return %c0_i32, %c0_i32_0 : i32, i32
  }
  func.func @transform_6(%arg0: i32) -> (i32, i32) {
    %c0_i32 = arith.constant 0 : i32
    %c0_i32_0 = arith.constant 0 : i32
    %c0_i32_1 = arith.constant 0 : i32
    return %c0_i32, %c0_i32_0 : i32, i32
  }
  func.func @transform_7(%arg0: i32) -> (i32, i32) {
    %c0_i32 = arith.constant 0 : i32
    %c0_i32_0 = arith.constant 0 : i32
    return %arg0, %c0_i32 : i32, i32
  }
}

</mosaic_0001>

<bundles_post_ra>
// kernel: tpu_custom_call.1
= control target key start
LH: loop header
LB: loop body
LE: loop exit
PB: predicated region body
PF: predicated region fallthrough
CT: control target
= control target key end

     0   :  { %12 = vsyncpa [#allocation3], 0  ;;  %s2573_s0 = inlined_call_operand.hbm [shape: f32[16,1000], index: 0, kind: input, shape index: {}]   ;;  %s2574_s1 = inlined_call_operand.hbm [shape: f32[1000,512], index: 1, kind: input, shape index: {}]   ;;  %s2575_s2 = inlined_call_operand.hbm [shape: f32[1,512], index: 2, kind: input, shape index: {}]   ;;  %s2576_s3 = inlined_call_operand.hbm [shape: f32[512,512], index: 3, kind: input, shape index: {}]   ;;  %s2577_s4 = inlined_call_operand.hbm [shape: f32[1,512], index: 4, kind: input, shape index: {}]   ;;  %s2578_s5 = inlined_call_operand.hbm [shape: f32[512,128], index: 5, kind: input, shape index: {}]   ;;  %s2579_s6 = inlined_call_operand.hbm [shape: f32[1,128], index: 6, kind: input, shape index: {}]   ;;  %s2580_s7 = inlined_call_operand.hbm [shape: f32[16,128], index: 7, kind: output, shape index: {}]  }
   0x1   :  { %13 = vsyncpa [#allocation6], 0 }
   0x2   :  { %14 = vsyncpa [#allocation9], 0 }
   0x3   :  { %15 = vsyncpa [#allocation12], 0 }
   0x4   :  { %16 = vsyncpa [#allocation4], 0  ;;  %s2399_s24 = smov [#allocation5]  }
   0x5   :  { %s34_s25 = sshll.u32 %s2399_s24, 4  ;;  %s35_s25 = int_to_ptr.vmem [resolvable:$true] %s34_s25 }
   0x6   :  { %s2237_s26 = scalar_lea.vmem %s35_s25, 64000  ;;  %p2242_p1 = scmp.lt.s32.totalorder %s35_s25, %s35_s25 }
   0x7   :  { %p2238_p0 = scmp.ne.s32.totalorder %s35_s25, %s2237_s26  ;;  %p2243_p2 = scmp.lt.s32.totalorder %s2237_s26, %s2237_s26 }
   0x9   :  { %p2244_p3 = por %p2243_p2, %p2242_p1 }
   0xb   :  { %p2245_p4 = pnand %p2244_p3, %p2238_p0 }
   0xd   :  { %2248 = shalt.err (!%p2245_p4)
}
   0xe   :  { %s2400_s27 = smov 512   ;;  %s2401_s28 = smov 32  }
   0xf   :  { %40 = dma.hbm_to_vmem [thread:$0]  %s2574_s1, 64000, %s35_s25, [#allocation6], %s2400_s27, %s2400_s27, %s2401_s28  }
  0x10   :  { %s2402_s8 = smov [#allocation8]   ;;  %s2403_s10 = smov [#allocation11]  }
  0x11   :  { %s56_s9 = sshll.u32 %s2402_s8, 4  ;;  %s78_s11 = sshll.u32 %s2403_s10, 4  ;;  %s57_s9 = int_to_ptr.vmem [resolvable:$true] %s56_s9  ;;  %s79_s11 = int_to_ptr.vmem [resolvable:$true] %s78_s11 }
  0x12   :  { %s2257_s12 = scalar_lea.vmem %s57_s9, 32768  ;;  %p2262_p6 = scmp.lt.s32.totalorder %s57_s9, %s57_s9 }
  0x13   :  { %p2258_p5 = scmp.ne.s32.totalorder %s57_s9, %s2257_s12  ;;  %p2263_p7 = scmp.lt.s32.totalorder %s2257_s12, %s2257_s12 }
  0x15   :  { %p2264_p8 = por %p2263_p7, %p2262_p6 }
  0x17   :  { %p2265_p9 = pnand %p2264_p8, %p2258_p5 }
  0x19   :  { %2268 = shalt.err (!%p2265_p9)
}
  0x1a   :  { %62 = dma.hbm_to_vmem [thread:$0]  %s2576_s3, 32768, %s57_s9, [#allocation9], %s2400_s27, %s2400_s27, %s2401_s28  }
  0x1b   :  { %s2277_s15 = scalar_lea.vmem %s79_s11, 8192  ;;  %p2282_p11 = scmp.lt.s32.totalorder %s79_s11, %s79_s11 }
  0x1c   :  { %p2278_p10 = scmp.ne.s32.totalorder %s79_s11, %s2277_s15  ;;  %p2283_p12 = scmp.lt.s32.totalorder %s2277_s15, %s2277_s15 }
  0x1e   :  { %p2284_p13 = por %p2283_p12, %p2282_p11 }
  0x20   :  { %p2285_p0 = pnand %p2284_p13, %p2278_p10 }
  0x22   :  { %2288 = shalt.err (!%p2285_p0)
}
  0x23   :  { %s2404_s1 = smov 128   ;;  %s2405_s16 = smov 8  }
  0x24   :  { %84 = dma.hbm_to_vmem [thread:$0]  %s2578_s5, 8192, %s79_s11, [#allocation12], %s2404_s1, %s2404_s1, %s2405_s16  }
  0x25   :  { %s2406_s19 = smov [#allocation2]  }
  0x26   :  { %s22_s20 = sshll.u32 %s2406_s19, 4  ;;  %s23_s20 = int_to_ptr.vmem [resolvable:$true] %s22_s20 }
  0x27   :  { %s2297_s3 = scalar_lea.vmem %s23_s20, 2048  ;;  %p2302_p2 = scmp.lt.s32.totalorder %s23_s20, %s23_s20 }
  0x28   :  { %p2298_p1 = scmp.ne.s32.totalorder %s23_s20, %s2297_s3  ;;  %p2303_p3 = scmp.lt.s32.totalorder %s2297_s3, %s2297_s3 }
  0x2a   :  { %p2304_p4 = por %p2303_p3, %p2302_p2 }
  0x2c   :  { %p2305_p5 = pnand %p2304_p4, %p2298_p1 }
  0x2e   :  { %2308 = shalt.err (!%p2305_p5)
}
  0x2f   :  { %s2407_s21 = smov 1024   ;;  %s2408_s22 = smov 64  }
  0x30   :  { %28 = dma.hbm_to_vmem [thread:$0]  %s2573_s0, 2048, %s23_s20, [#allocation3], %s2407_s21, %s2407_s21, %s2408_s22  }
  0x31   :  { %s2409_s25 = smov [#allocation7]   ;;  %s2410_s27 = smov [#allocation10]  }
  0x32   :  { %s47_s26 = sshll.u32 %s2409_s25, 4  ;;  %s69_s5 = sshll.u32 %s2410_s27, 4  ;;  %s48_s26 = int_to_ptr.vmem [resolvable:$true] %s47_s26  ;;  %s70_s5 = int_to_ptr.vmem [resolvable:$true] %s69_s5 }
  0x33   :  { %s2317_s28 = scalar_lea.vmem %s48_s26, 64  ;;  %p2322_p7 = scmp.lt.s32.totalorder %s48_s26, %s48_s26 }
  0x34   :  { %p2318_p6 = scmp.ne.s32.totalorder %s48_s26, %s2317_s28  ;;  %p2323_p8 = scmp.lt.s32.totalorder %s2317_s28, %s2317_s28 }
  0x36   :  { %p2324_p9 = por %p2323_p8, %p2322_p7 }
  0x38   :  { %p2325_p10 = pnand %p2324_p9, %p2318_p6 }
  0x3a   :  { %2328 = shalt.err (!%p2325_p10)
}
  0x3b   :  { %50 = dma.hbm_to_vmem [thread:$0]  %s2575_s2, 64, %s48_s26, [#allocation6]  }
  0x3c   :  { %s2337_s8 = scalar_lea.vmem %s70_s5, 64  ;;  %p2342_p12 = scmp.lt.s32.totalorder %s70_s5, %s70_s5 }
  0x3d   :  { %p2338_p11 = scmp.ne.s32.totalorder %s70_s5, %s2337_s8  ;;  %p2343_p13 = scmp.lt.s32.totalorder %s2337_s8, %s2337_s8 }
  0x3f   :  { %p2344_p0 = por %p2343_p13, %p2342_p12 }
  0x41   :  { %p2345_p1 = pnand %p2344_p0, %p2338_p11 }
  0x43   :  { %2348 = shalt.err (!%p2345_p1)
}
  0x44   :  { %72 = dma.hbm_to_vmem [thread:$0]  %s2577_s4, 64, %s70_s5, [#allocation9]  }
  0x45   :  { %s2411_s10 = smov [#allocation13]  }
  0x46   :  { %s91_s11 = sshll.u32 %s2411_s10, 4  ;;  %s92_s11 = int_to_ptr.vmem [resolvable:$true] %s91_s11 }
  0x47   :  { %s2357_s12 = scalar_lea.vmem %s92_s11, 16  ;;  %s2361_s13 = scalar_lea.vmem %s92_s11, 32 }
  0x48   :  { %p2358_p2 = scmp.ne.s32.totalorder %s92_s11, %s2357_s12  ;;  %p2362_p3 = scmp.lt.s32.totalorder %s92_s11, %s92_s11 }
  0x49   :  { %p2363_p4 = scmp.lt.s32.totalorder %s2361_s13, %s2357_s12 }
  0x4b   :  { %p2364_p5 = por %p2363_p4, %p2362_p3 }
  0x4d   :  { %p2365_p6 = pnand %p2364_p5, %p2358_p2 }
  0x4f   :  { %2368 = shalt.err (!%p2365_p6)
}
  0x50   :  { %94 = dma.hbm_to_vmem [thread:$0]  %s2579_s6, 16, %s92_s11, [#allocation12]  }
  0x51   :  { %2389 = dma.done.wait [#allocation3], 2048  }
  0x52   :  { %2390 = vsyncadd [#allocation3], 4294965248 }
  0x53   :  { %2391 = dma.done.wait [#allocation6], 64064  }
  0x54   :  { %2392 = vsyncadd [#allocation6], 4294903232 }
  0x55   :  { %2393 = dma.done.wait [#allocation9], 32832  }
  0x56   :  { %2394 = vsyncadd [#allocation9], 4294934464 }
  0x57   :  { %2395 = dma.done.wait [#allocation12], 8208  }
  0x58   :  { %2396 = vsyncadd [#allocation12], 4294959088  ;;  %v193_v0 = vld [vmem:[#allocation5 + $0x1e8] sm:$0xff]  ;;  %v192_v2 = vld [vmem:[#allocation5 + $0x1e0] sm:$0xff]  ;;  %vm654_vm0 = vcmask 850944   ;;  %s2412_s4 = smov [#allocation14]  }
  0x59   :  { %v321_v1 = vld [vmem:[#allocation5 + $0x5e8] sm:$0xff]  ;;  %661 = vmatprep.subr.mxu0 %v193_v0  ;;  %v320_v3 = vld [vmem:[#allocation5 + $0x5e0] sm:$0xff]  ;;  %s2107_s6 = sshll.u32 %s2412_s4, 4  ;;  %s2108_s6 = int_to_ptr.vmem [resolvable:$true] %s2107_s6 }
  0x5a   :  { %738 = vmatprep.subr.mxu1 %v321_v1  ;;  %v189_v4 = vld [vmem:[#allocation5 + $0x1c8] sm:$0xff]  ;;  %662 = vmatpush1.msra.mxu0 %v192_v2  ;;  %v188_v6 = vld [vmem:[#allocation5 + $0x1c0] sm:$0xff]  ;;  %s2369_s15 = scalar_lea.vmem %s2108_s6, 256  ;;  %p2374_p8 = scmp.lt.s32.totalorder %s2108_s6, %s2108_s6 }
  0x5b   :  { %v317_v5 = vld [vmem:[#allocation5 + $0x5c8] sm:$0xff]  ;;  %739 = vmatpush1.msra.mxu1 %v320_v3  ;;  %v316_v7 = vld [vmem:[#allocation5 + $0x5c0] sm:$0xff]  ;;  %663 = vmatprep.subr.mxu0 %v189_v4  ;;  %p2370_p7 = scmp.ne.s32.totalorder %s2108_s6, %s2369_s15  ;;  %p2375_p9 = scmp.lt.s32.totalorder %s2369_s15, %s2369_s15 }
  0x5c   :  { %v185_v8 = vld [vmem:[#allocation5 + $0x1a8] sm:$0xff]  ;;  %740 = vmatprep.subr.mxu1 %v317_v5  ;;  %v184_v10 = vld [vmem:[#allocation5 + $0x1a0] sm:$0xff]  ;;  %664 = vmatpush1.msra.mxu0 %v188_v6 }
  0x5d   :  { %v313_v9 = vld [vmem:[#allocation5 + $0x5a8] sm:$0xff]  ;;  %v312_v11 = vld [vmem:[#allocation5 + $0x5a0] sm:$0xff]  ;;  %741 = vmatpush1.msra.mxu1 %v316_v7  ;;  %665 = vmatprep.subr.mxu0 %v185_v8  ;;  %p2376_p10 = por %p2375_p9, %p2374_p8 }
  0x5e   :  { %v181_v12 = vld [vmem:[#allocation5 + $0x188] sm:$0xff]  ;;  %742 = vmatprep.subr.mxu1 %v313_v9  ;;  %v180_v14 = vld [vmem:[#allocation5 + $0x180] sm:$0xff]  ;;  %666 = vmatpush1.msra.mxu0 %v184_v10 }
  0x5f   :  { %v309_v13 = vld [vmem:[#allocation5 + $0x588] sm:$0xff]  ;;  %v308_v15 = vld [vmem:[#allocation5 + $0x580] sm:$0xff]  ;;  %743 = vmatpush1.msra.mxu1 %v312_v11  ;;  %667 = vmatprep.subr.mxu0 %v181_v12  ;;  %p2377_p11 = pnand %p2376_p10, %p2370_p7 }
  0x60   :  { %v177_v16 = vld [vmem:[#allocation5 + $0x168] sm:$0xff]  ;;  %744 = vmatprep.subr.mxu1 %v309_v13  ;;  %v176_v18 = vld [vmem:[#allocation5 + $0x160] sm:$0xff]  ;;  %668 = vmatpush1.msra.mxu0 %v180_v14 }
  0x61   :  { %v305_v17 = vld [vmem:[#allocation5 + $0x568] sm:$0xff]  ;;  %v304_v19 = vld [vmem:[#allocation5 + $0x560] sm:$0xff]  ;;  %745 = vmatpush1.msra.mxu1 %v308_v15  ;;  %669 = vmatprep.subr.mxu0 %v177_v16 }
  0x62   :  { %v173_v20 = vld [vmem:[#allocation5 + $0x148] sm:$0xff]  ;;  %746 = vmatprep.subr.mxu1 %v305_v17  ;;  %v172_v22 = vld [vmem:[#allocation5 + $0x140] sm:$0xff]  ;;  %670 = vmatpush1.msra.mxu0 %v176_v18 }
  0x63   :  { %v301_v21 = vld [vmem:[#allocation5 + $0x548] sm:$0xff]  ;;  %v300_v23 = vld [vmem:[#allocation5 + $0x540] sm:$0xff]  ;;  %747 = vmatpush1.msra.mxu1 %v304_v19  ;;  %671 = vmatprep.subr.mxu0 %v173_v20 }
  0x64   :  { %v169_v24 = vld [vmem:[#allocation5 + $0x128] sm:$0xff]  ;;  %748 = vmatprep.subr.mxu1 %v301_v21  ;;  %v168_v26 = vld [vmem:[#allocation5 + $0x120] sm:$0xff]  ;;  %672 = vmatpush1.msra.mxu0 %v172_v22 }
  0x65   :  { %v297_v25 = vld [vmem:[#allocation5 + $0x528] sm:$0xff]  ;;  %v296_v27 = vld [vmem:[#allocation5 + $0x520] sm:$0xff]  ;;  %749 = vmatpush1.msra.mxu1 %v300_v23  ;;  %673 = vmatprep.subr.mxu0 %v169_v24 }
  0x66   :  { %v165_v28 = vld [vmem:[#allocation5 + $0x108] sm:$0xff]  ;;  %750 = vmatprep.subr.mxu1 %v297_v25  ;;  %v164_v30 = vld [vmem:[#allocation5 + $0x100] sm:$0xff]  ;;  %674 = vmatpush1.msra.mxu0 %v168_v26 }
  0x67   :  { %v293_v29 = vld [vmem:[#allocation5 + $0x508] sm:$0xff]  ;;  %v292_v31 = vld [vmem:[#allocation5 + $0x500] sm:$0xff]  ;;  %751 = vmatpush1.msra.mxu1 %v296_v27  ;;  %675 = vmatprep.subr.mxu0 %v165_v28 }
  0x68   :  { %v161_v32 = vld [vmem:[#allocation5 + $0xe8] sm:$0xff]  ;;  %752 = vmatprep.subr.mxu1 %v293_v29  ;;  %v160_v34 = vld [vmem:[#allocation5 + $0xe0] sm:$0xff]  ;;  %676 = vmatpush1.msra.mxu0 %v164_v30 }
  0x69   :  { %v289_v33 = vld [vmem:[#allocation5 + $0x4e8] sm:$0xff]  ;;  %v288_v35 = vld [vmem:[#allocation5 + $0x4e0] sm:$0xff]  ;;  %753 = vmatpush1.msra.mxu1 %v292_v31  ;;  %677 = vmatprep.subr.mxu0 %v161_v32 }
  0x6a   :  { %v157_v36 = vld [vmem:[#allocation5 + $0xc8] sm:$0xff]  ;;  %754 = vmatprep.subr.mxu1 %v289_v33  ;;  %v156_v38 = vld [vmem:[#allocation5 + $0xc0] sm:$0xff]  ;;  %678 = vmatpush1.msra.mxu0 %v160_v34 }
  0x6b   :  { %v285_v37 = vld [vmem:[#allocation5 + $0x4c8] sm:$0xff]  ;;  %v284_v39 = vld [vmem:[#allocation5 + $0x4c0] sm:$0xff]  ;;  %755 = vmatpush1.msra.mxu1 %v288_v35  ;;  %679 = vmatprep.subr.mxu0 %v157_v36 }
  0x6c   :  { %v153_v40 = vld [vmem:[#allocation5 + $0xa8] sm:$0xff]  ;;  %756 = vmatprep.subr.mxu1 %v285_v37  ;;  %v152_v42 = vld [vmem:[#allocation5 + $0xa0] sm:$0xff]  ;;  %680 = vmatpush1.msra.mxu0 %v156_v38 }
  0x6d   :  { %v281_v41 = vld [vmem:[#allocation5 + $0x4a8] sm:$0xff]  ;;  %v280_v43 = vld [vmem:[#allocation5 + $0x4a0] sm:$0xff]  ;;  %757 = vmatpush1.msra.mxu1 %v284_v39  ;;  %681 = vmatprep.subr.mxu0 %v153_v40 }
  0x6e   :  { %v149_v44 = vld [vmem:[#allocation5 + $0x88] sm:$0xff]  ;;  %758 = vmatprep.subr.mxu1 %v281_v41  ;;  %v148_v46 = vld [vmem:[#allocation5 + $0x80] sm:$0xff]  ;;  %682 = vmatpush1.msra.mxu0 %v152_v42 }
  0x6f   :  { %v277_v45 = vld [vmem:[#allocation5 + $0x488] sm:$0xff]  ;;  %v276_v47 = vld [vmem:[#allocation5 + $0x480] sm:$0xff]  ;;  %759 = vmatpush1.msra.mxu1 %v280_v43  ;;  %683 = vmatprep.subr.mxu0 %v149_v44 }
  0x70   :  { %v145_v48 = vld [vmem:[#allocation5 + $0x68] sm:$0xff]  ;;  %760 = vmatprep.subr.mxu1 %v277_v45  ;;  %v144_v50 = vld [vmem:[#allocation5 + $0x60] sm:$0xff]  ;;  %684 = vmatpush1.msra.mxu0 %v148_v46 }
  0x71   :  { %v273_v49 = vld [vmem:[#allocation5 + $0x468] sm:$0xff]  ;;  %v272_v51 = vld [vmem:[#allocation5 + $0x460] sm:$0xff]  ;;  %761 = vmatpush1.msra.mxu1 %v276_v47  ;;  %685 = vmatprep.subr.mxu0 %v145_v48 }
  0x72   :  { %v141_v52 = vld [vmem:[#allocation5 + $0x48] sm:$0xff]  ;;  %762 = vmatprep.subr.mxu1 %v273_v49  ;;  %v140_v54 = vld [vmem:[#allocation5 + $0x40] sm:$0xff]  ;;  %686 = vmatpush1.msra.mxu0 %v144_v50 }
  0x73   :  { %v269_v53 = vld [vmem:[#allocation5 + $0x448] sm:$0xff]  ;;  %v268_v55 = vld [vmem:[#allocation5 + $0x440] sm:$0xff]  ;;  %763 = vmatpush1.msra.mxu1 %v272_v51  ;;  %687 = vmatprep.subr.mxu0 %v141_v52 }
  0x74   :  { %v137_v56 = vld [vmem:[#allocation5 + $0x28] sm:$0xff]  ;;  %764 = vmatprep.subr.mxu1 %v269_v53  ;;  %v136_v58 = vld [vmem:[#allocation5 + $0x20] sm:$0xff]  ;;  %688 = vmatpush1.msra.mxu0 %v140_v54 }
  0x75   :  { %v265_v57 = vld [vmem:[#allocation5 + $0x428] sm:$0xff]  ;;  %v264_v59 = vld [vmem:[#allocation5 + $0x420] sm:$0xff]  ;;  %765 = vmatpush1.msra.mxu1 %v268_v55  ;;  %689 = vmatprep.subr.mxu0 %v137_v56 }
  0x76   :  { %v133_v60 = vld [vmem:[#allocation5 + $0x8] sm:$0xff]  ;;  %766 = vmatprep.subr.mxu1 %v265_v57  ;;  %v132_v62 = vld [vmem:[#allocation5] sm:$0xff]  ;;  %690 = vmatpush1.msra.mxu0 %v136_v58 }
  0x77   :  { %v261_v61 = vld [vmem:[#allocation5 + $0x408] sm:$0xff]  ;;  %v260_v63 = vld [vmem:[#allocation5 + $0x400] sm:$0xff]  ;;  %767 = vmatpush1.msra.mxu1 %v264_v59  ;;  %691 = vmatprep.subr.mxu0 %v133_v60 }
  0x78   :  { %v257_v0 = vld [vmem:[#allocation5 + $0x3e8] sm:$0xff]  ;;  %768 = vmatprep.subr.mxu1 %v261_v61  ;;  %v256_v2 = vld [vmem:[#allocation5 + $0x3e0] sm:$0xff]  ;;  %692 = vmatpush1.msra.mxu0 %v132_v62 }
  0x79   :  { %v385_v1 = vld [vmem:[#allocation5 + $0x7e8] sm:$0xff]  ;;  %v384_v3 = vld [vmem:[#allocation5 + $0x7e0] sm:$0xff]  ;;  %769 = vmatpush1.msra.mxu1 %v260_v63  ;;  %693 = vmatprep.subr.mxu0 %v257_v0 }
  0x7a   :  { %v253_v4 = vld [vmem:[#allocation5 + $0x3c8] sm:$0xff]  ;;  %770 = vmatprep.subr.mxu1 %v385_v1  ;;  %v252_v6 = vld [vmem:[#allocation5 + $0x3c0] sm:$0xff]  ;;  %694 = vmatpush2.msra.mxu0 %v256_v2  ;;  %v119_v1 = vld [vmem:[#allocation2 + $0x18] sm:$0xff] }
  0x7b   :  { %v381_v5 = vld [vmem:[#allocation5 + $0x7c8] sm:$0xff]  ;;  %v380_v7 = vld [vmem:[#allocation5 + $0x7c0] sm:$0xff]  ;;  %771 = vmatpush2.msra.mxu1 %v384_v3  ;;  %695 = vmatprep.subr.mxu0 %v253_v4  ;;  %v118_v3 = vld [vmem:[#allocation2 + $0x10] sm:$0xff] }
  0x7c   :  { %v249_v8 = vld [vmem:[#allocation5 + $0x3a8] sm:$0xff]  ;;  %772 = vmatprep.subr.mxu1 %v381_v5  ;;  %v248_v10 = vld [vmem:[#allocation5 + $0x3a0] sm:$0xff]  ;;  %696 = vmatpush2.msra.mxu0 %v252_v6 }
  0x7d   :  { %v377_v9 = vld [vmem:[#allocation5 + $0x7a8] sm:$0xff]  ;;  %v376_v11 = vld [vmem:[#allocation5 + $0x7a0] sm:$0xff]  ;;  %773 = vmatpush2.msra.mxu1 %v380_v7  ;;  %697 = vmatprep.subr.mxu0 %v249_v8 }
  0x7e   :  { %v245_v12 = vld [vmem:[#allocation5 + $0x388] sm:$0xff]  ;;  %774 = vmatprep.subr.mxu1 %v377_v9  ;;  %v244_v14 = vld [vmem:[#allocation5 + $0x380] sm:$0xff]  ;;  %698 = vmatpush2.msra.mxu0 %v248_v10 }
  0x7f   :  { %v373_v13 = vld [vmem:[#allocation5 + $0x788] sm:$0xff]  ;;  %v372_v15 = vld [vmem:[#allocation5 + $0x780] sm:$0xff]  ;;  %775 = vmatpush2.msra.mxu1 %v376_v11  ;;  %699 = vmatprep.subr.mxu0 %v245_v12 }
  0x80   :  { %v241_v16 = vld [vmem:[#allocation5 + $0x368] sm:$0xff]  ;;  %776 = vmatprep.subr.mxu1 %v373_v13  ;;  %v240_v18 = vld [vmem:[#allocation5 + $0x360] sm:$0xff]  ;;  %700 = vmatpush2.msra.mxu0 %v244_v14 }
  0x81   :  { %v369_v17 = vld [vmem:[#allocation5 + $0x768] sm:$0xff]  ;;  %v368_v19 = vld [vmem:[#allocation5 + $0x760] sm:$0xff]  ;;  %777 = vmatpush2.msra.mxu1 %v372_v15  ;;  %701 = vmatprep.subr.mxu0 %v241_v16 }
  0x82   :  { %v237_v20 = vld [vmem:[#allocation5 + $0x348] sm:$0xff]  ;;  %778 = vmatprep.subr.mxu1 %v369_v17  ;;  %v236_v22 = vld [vmem:[#allocation5 + $0x340] sm:$0xff]  ;;  %702 = vmatpush2.msra.mxu0 %v240_v18 }
  0x83   :  { %v365_v21 = vld [vmem:[#allocation5 + $0x748] sm:$0xff]  ;;  %v364_v23 = vld [vmem:[#allocation5 + $0x740] sm:$0xff]  ;;  %779 = vmatpush2.msra.mxu1 %v368_v19  ;;  %703 = vmatprep.subr.mxu0 %v237_v20 }
  0x84   :  { %v233_v24 = vld [vmem:[#allocation5 + $0x328] sm:$0xff]  ;;  %780 = vmatprep.subr.mxu1 %v365_v21  ;;  %v232_v26 = vld [vmem:[#allocation5 + $0x320] sm:$0xff]  ;;  %704 = vmatpush2.msra.mxu0 %v236_v22 }
  0x85   :  { %v361_v25 = vld [vmem:[#allocation5 + $0x728] sm:$0xff]  ;;  %v360_v27 = vld [vmem:[#allocation5 + $0x720] sm:$0xff]  ;;  %781 = vmatpush2.msra.mxu1 %v364_v23  ;;  %705 = vmatprep.subr.mxu0 %v233_v24 }
  0x86   :  { %v229_v28 = vld [vmem:[#allocation5 + $0x308] sm:$0xff]  ;;  %782 = vmatprep.subr.mxu1 %v361_v25  ;;  %v228_v30 = vld [vmem:[#allocation5 + $0x300] sm:$0xff]  ;;  %706 = vmatpush2.msra.mxu0 %v232_v26 }
  0x87   :  { %v357_v29 = vld [vmem:[#allocation5 + $0x708] sm:$0xff]  ;;  %v356_v31 = vld [vmem:[#allocation5 + $0x700] sm:$0xff]  ;;  %783 = vmatpush2.msra.mxu1 %v360_v27  ;;  %707 = vmatprep.subr.mxu0 %v229_v28 }
  0x88   :  { %v225_v32 = vld [vmem:[#allocation5 + $0x2e8] sm:$0xff]  ;;  %784 = vmatprep.subr.mxu1 %v357_v29  ;;  %v224_v34 = vld [vmem:[#allocation5 + $0x2e0] sm:$0xff]  ;;  %708 = vmatpush2.msra.mxu0 %v228_v30 }
  0x89   :  { %v353_v33 = vld [vmem:[#allocation5 + $0x6e8] sm:$0xff]  ;;  %v352_v35 = vld [vmem:[#allocation5 + $0x6e0] sm:$0xff]  ;;  %785 = vmatpush2.msra.mxu1 %v356_v31  ;;  %709 = vmatprep.subr.mxu0 %v225_v32 }
  0x8a   :  { %v221_v36 = vld [vmem:[#allocation5 + $0x2c8] sm:$0xff]  ;;  %786 = vmatprep.subr.mxu1 %v353_v33  ;;  %v220_v38 = vld [vmem:[#allocation5 + $0x2c0] sm:$0xff]  ;;  %710 = vmatpush2.msra.mxu0 %v224_v34 }
  0x8b   :  { %v349_v37 = vld [vmem:[#allocation5 + $0x6c8] sm:$0xff]  ;;  %v348_v39 = vld [vmem:[#allocation5 + $0x6c0] sm:$0xff]  ;;  %787 = vmatpush2.msra.mxu1 %v352_v35  ;;  %711 = vmatprep.subr.mxu0 %v221_v36 }
  0x8c   :  { %v217_v40 = vld [vmem:[#allocation5 + $0x2a8] sm:$0xff]  ;;  %788 = vmatprep.subr.mxu1 %v349_v37  ;;  %v216_v42 = vld [vmem:[#allocation5 + $0x2a0] sm:$0xff]  ;;  %712 = vmatpush2.msra.mxu0 %v220_v38 }
  0x8d   :  { %v345_v41 = vld [vmem:[#allocation5 + $0x6a8] sm:$0xff]  ;;  %v344_v43 = vld [vmem:[#allocation5 + $0x6a0] sm:$0xff]  ;;  %789 = vmatpush2.msra.mxu1 %v348_v39  ;;  %713 = vmatprep.subr.mxu0 %v217_v40 }
  0x8e   :  { %v213_v44 = vld [vmem:[#allocation5 + $0x288] sm:$0xff]  ;;  %790 = vmatprep.subr.mxu1 %v345_v41  ;;  %v212_v46 = vld [vmem:[#allocation5 + $0x280] sm:$0xff]  ;;  %714 = vmatpush2.msra.mxu0 %v216_v42 }
  0x8f   :  { %v341_v45 = vld [vmem:[#allocation5 + $0x688] sm:$0xff]  ;;  %v340_v47 = vld [vmem:[#allocation5 + $0x680] sm:$0xff]  ;;  %791 = vmatpush2.msra.mxu1 %v344_v43  ;;  %715 = vmatprep.subr.mxu0 %v213_v44 }
  0x90   :  { %v209_v48 = vld [vmem:[#allocation5 + $0x268] sm:$0xff]  ;;  %792 = vmatprep.subr.mxu1 %v341_v45  ;;  %v208_v50 = vld [vmem:[#allocation5 + $0x260] sm:$0xff]  ;;  %716 = vmatpush2.msra.mxu0 %v212_v46 }
  0x91   :  { %v337_v49 = vld [vmem:[#allocation5 + $0x668] sm:$0xff]  ;;  %v336_v51 = vld [vmem:[#allocation5 + $0x660] sm:$0xff]  ;;  %793 = vmatpush2.msra.mxu1 %v340_v47  ;;  %717 = vmatprep.subr.mxu0 %v209_v48 }
  0x92   :  { %v205_v52 = vld [vmem:[#allocation5 + $0x248] sm:$0xff]  ;;  %794 = vmatprep.subr.mxu1 %v337_v49  ;;  %v204_v54 = vld [vmem:[#allocation5 + $0x240] sm:$0xff]  ;;  %718 = vmatpush2.msra.mxu0 %v208_v50 }
  0x93   :  { %v333_v53 = vld [vmem:[#allocation5 + $0x648] sm:$0xff]  ;;  %v332_v55 = vld [vmem:[#allocation5 + $0x640] sm:$0xff]  ;;  %795 = vmatpush2.msra.mxu1 %v336_v51  ;;  %719 = vmatprep.subr.mxu0 %v205_v52 }
  0x94   :  { %v201_v56 = vld [vmem:[#allocation5 + $0x228] sm:$0xff]  ;;  %796 = vmatprep.subr.mxu1 %v333_v53  ;;  %v200_v58 = vld [vmem:[#allocation5 + $0x220] sm:$0xff]  ;;  %720 = vmatpush2.msra.mxu0 %v204_v54 }
  0x95   :  { %v329_v57 = vld [vmem:[#allocation5 + $0x628] sm:$0xff]  ;;  %v328_v59 = vld [vmem:[#allocation5 + $0x620] sm:$0xff]  ;;  %797 = vmatpush2.msra.mxu1 %v332_v55  ;;  %721 = vmatprep.subr.mxu0 %v201_v56 }
  0x96   :  { %v197_v60 = vld [vmem:[#allocation5 + $0x208] sm:$0xff]  ;;  %798 = vmatprep.subr.mxu1 %v329_v57  ;;  %v196_v62 = vld [vmem:[#allocation5 + $0x200] sm:$0xff]  ;;  %722 = vmatpush2.msra.mxu0 %v200_v58 }
  0x97   :  { %v325_v61 = vld [vmem:[#allocation5 + $0x608] sm:$0xff]  ;;  %799 = vmatpush2.msra.mxu1 %v328_v59  ;;  %v324_v0 = vld [vmem:[#allocation5 + $0x600] sm:$0xff]  ;;  %723 = vmatprep.subr.mxu0 %v197_v60 }
  0x98   :  { %v117_v63 = vld [vmem:[#allocation2 + $0x8] sm:$0xff]  ;;  %800 = vmatprep.subr.mxu1 %v325_v61  ;;  %v116_v2 = vld [vmem:[#allocation2] sm:$0xff]  ;;  %724 = vmatpush2.msra.mxu0 %v196_v62 }
  0x99   :  { %725 = vmatprep.mubr.f32.mxu0 %v117_v63  ;;  %v449_v4 = vld [vmem:[#allocation5 + $0x9e8] sm:$0xff]  ;;  %801 = vmatpush2.msra.mxu1 %v324_v0  ;;  %v448_v6 = vld [vmem:[#allocation5 + $0x9e0] sm:$0xff] }
  0x9a   :  { %v577_v5 = vld [vmem:[#allocation5 + $0xde8] sm:$0xff]  ;;  %802 = vmatprep.mubr.f32.mxu1 %v119_v1  ;;  %v576_v7 = vld [vmem:[#allocation5 + $0xde0] sm:$0xff]  ;;  %726 = vmatmul.mubr.f32.vlgmr.msra.gmra.mxu0 %v116_v2 }
  0x9b   :  { %803 = vmatmul.mubr.f32.vlgmr.msra.gmra.mxu1 %v118_v3  ;;  %v445_v8 = vld [vmem:[#allocation5 + $0x9c8] sm:$0xff]  ;;  %815 = vmatprep.subr.mxu0 %v449_v4  ;;  %v444_v10 = vld [vmem:[#allocation5 + $0x9c0] sm:$0xff] }
  0x9c   :  { %v573_v9 = vld [vmem:[#allocation5 + $0xdc8] sm:$0xff]  ;;  %892 = vmatprep.subr.mxu1 %v577_v5  ;;  %v572_v11 = vld [vmem:[#allocation5 + $0xdc0] sm:$0xff]  ;;  %816 = vmatpush1.msra.mxu0 %v448_v6 }
  0x9d   :  { %893 = vmatpush1.msra.mxu1 %v576_v7  ;;  %v441_v12 = vld [vmem:[#allocation5 + $0x9a8] sm:$0xff]  ;;  %817 = vmatprep.subr.mxu0 %v445_v8  ;;  %v440_v14 = vld [vmem:[#allocation5 + $0x9a0] sm:$0xff] }
  0x9e   :  { %v569_v13 = vld [vmem:[#allocation5 + $0xda8] sm:$0xff]  ;;  %894 = vmatprep.subr.mxu1 %v573_v9  ;;  %v568_v15 = vld [vmem:[#allocation5 + $0xda0] sm:$0xff]  ;;  %818 = vmatpush1.msra.mxu0 %v444_v10 }
  0x9f   :  { %895 = vmatpush1.msra.mxu1 %v572_v11  ;;  %v437_v16 = vld [vmem:[#allocation5 + $0x988] sm:$0xff]  ;;  %819 = vmatprep.subr.mxu0 %v441_v12  ;;  %v436_v18 = vld [vmem:[#allocation5 + $0x980] sm:$0xff] }
  0xa0   :  { %v565_v17 = vld [vmem:[#allocation5 + $0xd88] sm:$0xff]  ;;  %896 = vmatprep.subr.mxu1 %v569_v13  ;;  %v564_v19 = vld [vmem:[#allocation5 + $0xd80] sm:$0xff]  ;;  %820 = vmatpush1.msra.mxu0 %v440_v14 }
  0xa1   :  { %897 = vmatpush1.msra.mxu1 %v568_v15  ;;  %v433_v20 = vld [vmem:[#allocation5 + $0x968] sm:$0xff]  ;;  %821 = vmatprep.subr.mxu0 %v437_v16  ;;  %v432_v22 = vld [vmem:[#allocation5 + $0x960] sm:$0xff] }
  0xa2   :  { %v561_v21 = vld [vmem:[#allocation5 + $0xd68] sm:$0xff]  ;;  %898 = vmatprep.subr.mxu1 %v565_v17  ;;  %v560_v23 = vld [vmem:[#allocation5 + $0xd60] sm:$0xff]  ;;  %822 = vmatpush1.msra.mxu0 %v436_v18 }
  0xa3   :  { %899 = vmatpush1.msra.mxu1 %v564_v19  ;;  %v429_v24 = vld [vmem:[#allocation5 + $0x948] sm:$0xff]  ;;  %823 = vmatprep.subr.mxu0 %v433_v20  ;;  %v428_v26 = vld [vmem:[#allocation5 + $0x940] sm:$0xff] }
  0xa4   :  { %v557_v25 = vld [vmem:[#allocation5 + $0xd48] sm:$0xff]  ;;  %900 = vmatprep.subr.mxu1 %v561_v21  ;;  %v556_v27 = vld [vmem:[#allocation5 + $0xd40] sm:$0xff]  ;;  %824 = vmatpush1.msra.mxu0 %v432_v22 }
  0xa5   :  { %901 = vmatpush1.msra.mxu1 %v560_v23  ;;  %v425_v28 = vld [vmem:[#allocation5 + $0x928] sm:$0xff]  ;;  %825 = vmatprep.subr.mxu0 %v429_v24  ;;  %v424_v30 = vld [vmem:[#allocation5 + $0x920] sm:$0xff] }
  0xa6   :  { %v553_v29 = vld [vmem:[#allocation5 + $0xd28] sm:$0xff]  ;;  %902 = vmatprep.subr.mxu1 %v557_v25  ;;  %v552_v31 = vld [vmem:[#allocation5 + $0xd20] sm:$0xff]  ;;  %826 = vmatpush1.msra.mxu0 %v428_v26 }
  0xa7   :  { %903 = vmatpush1.msra.mxu1 %v556_v27  ;;  %v421_v32 = vld [vmem:[#allocation5 + $0x908] sm:$0xff]  ;;  %827 = vmatprep.subr.mxu0 %v425_v28  ;;  %v420_v34 = vld [vmem:[#allocation5 + $0x900] sm:$0xff] }
  0xa8   :  { %v549_v33 = vld [vmem:[#allocation5 + $0xd08] sm:$0xff]  ;;  %904 = vmatprep.subr.mxu1 %v553_v29  ;;  %v548_v35 = vld [vmem:[#allocation5 + $0xd00] sm:$0xff]  ;;  %828 = vmatpush1.msra.mxu0 %v424_v30 }
  0xa9   :  { %905 = vmatpush1.msra.mxu1 %v552_v31  ;;  %v417_v36 = vld [vmem:[#allocation5 + $0x8e8] sm:$0xff]  ;;  %829 = vmatprep.subr.mxu0 %v421_v32  ;;  %v416_v38 = vld [vmem:[#allocation5 + $0x8e0] sm:$0xff] }
  0xaa   :  { %v545_v37 = vld [vmem:[#allocation5 + $0xce8] sm:$0xff]  ;;  %906 = vmatprep.subr.mxu1 %v549_v33  ;;  %v544_v39 = vld [vmem:[#allocation5 + $0xce0] sm:$0xff]  ;;  %830 = vmatpush1.msra.mxu0 %v420_v34 }
  0xab   :  { %907 = vmatpush1.msra.mxu1 %v548_v35  ;;  %v413_v40 = vld [vmem:[#allocation5 + $0x8c8] sm:$0xff]  ;;  %831 = vmatprep.subr.mxu0 %v417_v36  ;;  %v412_v42 = vld [vmem:[#allocation5 + $0x8c0] sm:$0xff] }
  0xac   :  { %v541_v41 = vld [vmem:[#allocation5 + $0xcc8] sm:$0xff]  ;;  %908 = vmatprep.subr.mxu1 %v545_v37  ;;  %v540_v43 = vld [vmem:[#allocation5 + $0xcc0] sm:$0xff]  ;;  %832 = vmatpush1.msra.mxu0 %v416_v38 }
  0xad   :  { %909 = vmatpush1.msra.mxu1 %v544_v39  ;;  %v409_v44 = vld [vmem:[#allocation5 + $0x8a8] sm:$0xff]  ;;  %833 = vmatprep.subr.mxu0 %v413_v40  ;;  %v408_v46 = vld [vmem:[#allocation5 + $0x8a0] sm:$0xff] }
  0xae   :  { %v537_v45 = vld [vmem:[#allocation5 + $0xca8] sm:$0xff]  ;;  %910 = vmatprep.subr.mxu1 %v541_v41  ;;  %v536_v47 = vld [vmem:[#allocation5 + $0xca0] sm:$0xff]  ;;  %834 = vmatpush1.msra.mxu0 %v412_v42 }
  0xaf   :  { %911 = vmatpush1.msra.mxu1 %v540_v43  ;;  %v405_v48 = vld [vmem:[#allocation5 + $0x888] sm:$0xff]  ;;  %835 = vmatprep.subr.mxu0 %v409_v44  ;;  %v404_v50 = vld [vmem:[#allocation5 + $0x880] sm:$0xff] }
  0xb0   :  { %v533_v49 = vld [vmem:[#allocation5 + $0xc88] sm:$0xff]  ;;  %912 = vmatprep.subr.mxu1 %v537_v45  ;;  %v532_v51 = vld [vmem:[#allocation5 + $0xc80] sm:$0xff]  ;;  %836 = vmatpush1.msra.mxu0 %v408_v46  ;;  %v127_v46 = vld [vmem:[#allocation2 + $0x58] sm:$0xff] }
  0xb1   :  { %913 = vmatpush1.msra.mxu1 %v536_v47  ;;  %v401_v52 = vld [vmem:[#allocation5 + $0x868] sm:$0xff]  ;;  %837 = vmatprep.subr.mxu0 %v405_v48  ;;  %v400_v54 = vld [vmem:[#allocation5 + $0x860] sm:$0xff] }
  0xb2   :  { %v529_v53 = vld [vmem:[#allocation5 + $0xc68] sm:$0xff]  ;;  %914 = vmatprep.subr.mxu1 %v533_v49  ;;  %v528_v55 = vld [vmem:[#allocation5 + $0xc60] sm:$0xff]  ;;  %838 = vmatpush1.msra.mxu0 %v404_v50  ;;  %v126_v49 = vld [vmem:[#allocation2 + $0x50] sm:$0xff] }
  0xb3   :  { %915 = vmatpush1.msra.mxu1 %v532_v51  ;;  %v397_v56 = vld [vmem:[#allocation5 + $0x848] sm:$0xff]  ;;  %839 = vmatprep.subr.mxu0 %v401_v52  ;;  %v396_v58 = vld [vmem:[#allocation5 + $0x840] sm:$0xff] }
  0xb4   :  { %v525_v57 = vld [vmem:[#allocation5 + $0xc48] sm:$0xff]  ;;  %916 = vmatprep.subr.mxu1 %v529_v53  ;;  %v524_v59 = vld [vmem:[#allocation5 + $0xc40] sm:$0xff]  ;;  %840 = vmatpush1.msra.mxu0 %v400_v54 }
  0xb5   :  { %917 = vmatpush1.msra.mxu1 %v528_v55  ;;  %v393_v60 = vld [vmem:[#allocation5 + $0x828] sm:$0xff]  ;;  %841 = vmatprep.subr.mxu0 %v397_v56  ;;  %v392_v62 = vld [vmem:[#allocation5 + $0x820] sm:$0xff] }
  0xb6   :  { %v521_v61 = vld [vmem:[#allocation5 + $0xc28] sm:$0xff]  ;;  %918 = vmatprep.subr.mxu1 %v525_v57  ;;  %v520_v63 = vld [vmem:[#allocation5 + $0xc20] sm:$0xff]  ;;  %842 = vmatpush1.msra.mxu0 %v396_v58 }
  0xb7   :  { %919 = vmatpush1.msra.mxu1 %v524_v59  ;;  %v389_v0 = vld [vmem:[#allocation5 + $0x808] sm:$0xff]  ;;  %843 = vmatprep.subr.mxu0 %v393_v60  ;;  %v388_v2 = vld [vmem:[#allocation5 + $0x800] sm:$0xff]  ;;  %v123_v60 = vld [vmem:[#allocation2 + $0x38] sm:$0xff] }
  0xb8   :  { %v517_v1 = vld [vmem:[#allocation5 + $0xc08] sm:$0xff]  ;;  %920 = vmatprep.subr.mxu1 %v521_v61  ;;  %v516_v3 = vld [vmem:[#allocation5 + $0xc00] sm:$0xff]  ;;  %844 = vmatpush1.msra.mxu0 %v392_v62  ;;  %v122_v62 = vld [vmem:[#allocation2 + $0x30] sm:$0xff] }
  0xb9   :  { %921 = vmatpush1.msra.mxu1 %v520_v63  ;;  %v513_v4 = vld [vmem:[#allocation5 + $0xbe8] sm:$0xff]  ;;  %845 = vmatprep.subr.mxu0 %v389_v0  ;;  %v512_v6 = vld [vmem:[#allocation5 + $0xbe0] sm:$0xff]  ;;  %v195_v63 = vld [vmem:[#allocation5 + $0x1f8] sm:$0xff] }
  0xba   :  { %v629_v5 = vld [vmem:[#allocation5 + $0xf88] sm:$0xff]  ;;  %922 = vmatprep.subr.mxu1 %v517_v1  ;;  %v628_v7 = vld [vmem:[#allocation5 + $0xf80] sm:$0xff]  ;;  %846 = vmatpush1.msra.mxu0 %v388_v2  ;;  %v194_v1 = vld [vmem:[#allocation5 + $0x1f0] sm:$0xff] }
  0xbb   :  { %923 = vmatpush1.msra.mxu1 %v516_v3  ;;  %v509_v8 = vld [vmem:[#allocation5 + $0xbc8] sm:$0xff]  ;;  %847 = vmatprep.subr.mxu0 %v513_v4  ;;  %v508_v10 = vld [vmem:[#allocation5 + $0xbc0] sm:$0xff]  ;;  %v191_v3 = vld [vmem:[#allocation5 + $0x1d8] sm:$0xff] }
  0xbc   :  { %v625_v9 = vld [vmem:[#allocation5 + $0xf68] sm:$0xff]  ;;  %930 = vmatprep.subr.mxu1 %v629_v5  ;;  %v624_v11 = vld [vmem:[#allocation5 + $0xf60] sm:$0xff]  ;;  %848 = vmatpush2.msra.mxu0 %v512_v6  ;;  %v190_v5 = vld [vmem:[#allocation5 + $0x1d0] sm:$0xff] }
  0xbd   :  { %931 = vmatpush2.msra.mxu1 %v628_v7  ;;  %v505_v12 = vld [vmem:[#allocation5 + $0xba8] sm:$0xff]  ;;  %849 = vmatprep.subr.mxu0 %v509_v8  ;;  %v504_v14 = vld [vmem:[#allocation5 + $0xba0] sm:$0xff]  ;;  %v187_v7 = vld [vmem:[#allocation5 + $0x1b8] sm:$0xff] }
  0xbe   :  { %v621_v13 = vld [vmem:[#allocation5 + $0xf48] sm:$0xff]  ;;  %932 = vmatprep.subr.mxu1 %v625_v9  ;;  %v620_v15 = vld [vmem:[#allocation5 + $0xf40] sm:$0xff]  ;;  %850 = vmatpush2.msra.mxu0 %v508_v10  ;;  %v186_v10 = vld [vmem:[#allocation5 + $0x1b0] sm:$0xff] }
  0xbf   :  { %933 = vmatpush2.msra.mxu1 %v624_v11  ;;  %v501_v16 = vld [vmem:[#allocation5 + $0xb88] sm:$0xff]  ;;  %851 = vmatprep.subr.mxu0 %v505_v12  ;;  %v500_v18 = vld [vmem:[#allocation5 + $0xb80] sm:$0xff]  ;;  %v183_v12 = vld [vmem:[#allocation5 + $0x198] sm:$0xff] }
  0xc0   :  { %v617_v17 = vld [vmem:[#allocation5 + $0xf28] sm:$0xff]  ;;  %934 = vmatprep.subr.mxu1 %v621_v13  ;;  %v616_v19 = vld [vmem:[#allocation5 + $0xf20] sm:$0xff]  ;;  %852 = vmatpush2.msra.mxu0 %v504_v14  ;;  %v323_v13 = vld [vmem:[#allocation5 + $0x5f8] sm:$0xff] }
  0xc1   :  { %935 = vmatpush2.msra.mxu1 %v620_v15  ;;  %v497_v20 = vld [vmem:[#allocation5 + $0xb68] sm:$0xff]  ;;  %853 = vmatprep.subr.mxu0 %v501_v16  ;;  %v496_v22 = vld [vmem:[#allocation5 + $0xb60] sm:$0xff]  ;;  %v182_v14 = vld [vmem:[#allocation5 + $0x190] sm:$0xff] }
  0xc2   :  { %v613_v21 = vld [vmem:[#allocation5 + $0xf08] sm:$0xff]  ;;  %936 = vmatprep.subr.mxu1 %v617_v17  ;;  %v612_v23 = vld [vmem:[#allocation5 + $0xf00] sm:$0xff]  ;;  %854 = vmatpush2.msra.mxu0 %v500_v18  ;;  %v322_v15 = vld [vmem:[#allocation5 + $0x5f0] sm:$0xff] }
  0xc3   :  { %937 = vmatpush2.msra.mxu1 %v616_v19  ;;  %v493_v24 = vld [vmem:[#allocation5 + $0xb48] sm:$0xff]  ;;  %855 = vmatprep.subr.mxu0 %v497_v20  ;;  %v492_v26 = vld [vmem:[#allocation5 + $0xb40] sm:$0xff]  ;;  %v179_v16 = vld [vmem:[#allocation5 + $0x178] sm:$0xff] }
  0xc4   :  { %v609_v25 = vld [vmem:[#allocation5 + $0xee8] sm:$0xff]  ;;  %938 = vmatprep.subr.mxu1 %v613_v21  ;;  %v608_v27 = vld [vmem:[#allocation5 + $0xee0] sm:$0xff]  ;;  %856 = vmatpush2.msra.mxu0 %v496_v22  ;;  %v319_v17 = vld [vmem:[#allocation5 + $0x5d8] sm:$0xff] }
  0xc5   :  { %939 = vmatpush2.msra.mxu1 %v612_v23  ;;  %v489_v28 = vld [vmem:[#allocation5 + $0xb28] sm:$0xff]  ;;  %857 = vmatprep.subr.mxu0 %v493_v24  ;;  %v488_v30 = vld [vmem:[#allocation5 + $0xb20] sm:$0xff]  ;;  %v178_v19 = vld [vmem:[#allocation5 + $0x170] sm:$0xff] }
  0xc6   :  { %v605_v29 = vld [vmem:[#allocation5 + $0xec8] sm:$0xff]  ;;  %940 = vmatprep.subr.mxu1 %v609_v25  ;;  %v604_v31 = vld [vmem:[#allocation5 + $0xec0] sm:$0xff]  ;;  %858 = vmatpush2.msra.mxu0 %v492_v26  ;;  %v318_v20 = vld [vmem:[#allocation5 + $0x5d0] sm:$0xff] }
  0xc7   :  { %941 = vmatpush2.msra.mxu1 %v608_v27  ;;  %v485_v32 = vld [vmem:[#allocation5 + $0xb08] sm:$0xff]  ;;  %859 = vmatprep.subr.mxu0 %v489_v28  ;;  %v484_v34 = vld [vmem:[#allocation5 + $0xb00] sm:$0xff]  ;;  %v175_v21 = vld [vmem:[#allocation5 + $0x158] sm:$0xff] }
  0xc8   :  { %v601_v33 = vld [vmem:[#allocation5 + $0xea8] sm:$0xff]  ;;  %942 = vmatprep.subr.mxu1 %v605_v29  ;;  %v600_v35 = vld [vmem:[#allocation5 + $0xea0] sm:$0xff]  ;;  %860 = vmatpush2.msra.mxu0 %v488_v30  ;;  %v315_v23 = vld [vmem:[#allocation5 + $0x5b8] sm:$0xff] }
  0xc9   :  { %943 = vmatpush2.msra.mxu1 %v604_v31  ;;  %v481_v36 = vld [vmem:[#allocation5 + $0xae8] sm:$0xff]  ;;  %861 = vmatprep.subr.mxu0 %v485_v32  ;;  %v480_v38 = vld [vmem:[#allocation5 + $0xae0] sm:$0xff]  ;;  %v2483_v24 = vld [vmem:[#allocation2 + $0x78] sm:$0xff] }
  0xca   :  { %v597_v37 = vld [vmem:[#allocation5 + $0xe88] sm:$0xff]  ;;  %944 = vmatprep.subr.mxu1 %v601_v33  ;;  %v596_v39 = vld [vmem:[#allocation5 + $0xe80] sm:$0xff]  ;;  %862 = vmatpush2.msra.mxu0 %v484_v34  ;;  %v174_v25 = vld [vmem:[#allocation5 + $0x150] sm:$0xff] }
  0xcb   :  { %945 = vmatpush2.msra.mxu1 %v600_v35  ;;  %v125_v40 = vld [vmem:[#allocation2 + $0x48] sm:$0xff]  ;;  %863 = vmatprep.subr.mxu0 %v481_v36  ;;  %v124_v43 = vld [vmem:[#allocation2 + $0x40] sm:$0xff]  ;;  %v314_v26 = vld [vmem:[#allocation5 + $0x5b0] sm:$0xff] }
  0xcc   :  { %v477_v41 = vld [vmem:[#allocation5 + $0xac8] sm:$0xff]  ;;  %946 = vmatprep.subr.mxu1 %v597_v37  ;;  %864 = vmatpush2.msra.mxu0 %v480_v38  ;;  %v476_v44 = vld [vmem:[#allocation5 + $0xac0] sm:$0xff]  ;;  %v2485_v27 = vld [vmem:[#allocation2 + $0x70] sm:$0xff] }
  0xcd   :  { %v593_v42 = vld [vmem:[#allocation5 + $0xe68] sm:$0xff]  ;;  %947 = vmatpush2.msra.mxu1 %v596_v39  ;;  %v592_v45 = vld [vmem:[#allocation5 + $0xe60] sm:$0xff]  ;;  %731 = vmatprep.mubr.f32.mxu0 %v125_v40  ;;  %v171_v28 = vld [vmem:[#allocation5 + $0x138] sm:$0xff] }
  0xce   :  { %865 = vmatprep.subr.mxu0 %v477_v41  ;;  %v473_v47 = vld [vmem:[#allocation5 + $0xaa8] sm:$0xff]  ;;  %948 = vmatprep.subr.mxu1 %v593_v42  ;;  %v472_v50 = vld [vmem:[#allocation5 + $0xaa0] sm:$0xff]  ;;  %v311_v29 = vld [vmem:[#allocation5 + $0x598] sm:$0xff] }
  0xcf   :  { %732 = vmatmul.mubr.f32.gmra.mxu0 %v124_v43  ;;  %v589_v48 = vld [vmem:[#allocation5 + $0xe48] sm:$0xff]  ;;  %949 = vmatpush2.msra.mxu1 %v592_v45  ;;  %v588_v51 = vld [vmem:[#allocation5 + $0xe40] sm:$0xff]  ;;  %v170_v30 = vld [vmem:[#allocation5 + $0x130] sm:$0xff] }
  0xd0   :  { %866 = vmatpush2.msra.mxu0 %v476_v44  ;;  %808 = vmatprep.mubr.f32.mxu1 %v127_v46  ;;  %v469_v52 = vld [vmem:[#allocation5 + $0xa88] sm:$0xff]  ;;  %v468_v54 = vld [vmem:[#allocation5 + $0xa80] sm:$0xff]  ;;  %v310_v31 = vld [vmem:[#allocation5 + $0x590] sm:$0xff] }
  0xd1   :  { %867 = vmatprep.subr.mxu0 %v473_v47  ;;  %v585_v53 = vld [vmem:[#allocation5 + $0xe28] sm:$0xff]  ;;  %950 = vmatprep.subr.mxu1 %v589_v48  ;;  %v584_v55 = vld [vmem:[#allocation5 + $0xe20] sm:$0xff]  ;;  %v167_v32 = vld [vmem:[#allocation5 + $0x118] sm:$0xff] }
  0xd2   :  { %809 = vmatmul.mubr.f32.gmra.mxu1 %v126_v49  ;;  %868 = vmatpush2.msra.mxu0 %v472_v50  ;;  %v465_v56 = vld [vmem:[#allocation5 + $0xa68] sm:$0xff]  ;;  %v464_v58 = vld [vmem:[#allocation5 + $0xa60] sm:$0xff]  ;;  %v307_v33 = vld [vmem:[#allocation5 + $0x578] sm:$0xff] }
  0xd3   :  { %951 = vmatpush2.msra.mxu1 %v588_v51  ;;  %v581_v57 = vld [vmem:[#allocation5 + $0xe08] sm:$0xff]  ;;  %869 = vmatprep.subr.mxu0 %v469_v52  ;;  %v580_v59 = vld [vmem:[#allocation5 + $0xe00] sm:$0xff]  ;;  %v166_v34 = vld [vmem:[#allocation5 + $0x110] sm:$0xff] }
  0xd4   :  { %952 = vmatprep.subr.mxu1 %v585_v53  ;;  %870 = vmatpush2.msra.mxu0 %v468_v54  ;;  %v461_v61 = vld [vmem:[#allocation5 + $0xa48] sm:$0xff]  ;;  %v460_v0 = vld [vmem:[#allocation5 + $0xa40] sm:$0xff]  ;;  %v306_v35 = vld [vmem:[#allocation5 + $0x570] sm:$0xff] }
  0xd5   :  { %953 = vmatpush2.msra.mxu1 %v584_v55  ;;  %871 = vmatprep.subr.mxu0 %v465_v56  ;;  %v457_v2 = vld [vmem:[#allocation5 + $0xa28] sm:$0xff]  ;;  %v456_v4 = vld [vmem:[#allocation5 + $0xa20] sm:$0xff]  ;;  %v163_v36 = vld [vmem:[#allocation5 + $0xf8] sm:$0xff] }
  0xd6   :  { %954 = vmatprep.subr.mxu1 %v581_v57  ;;  %872 = vmatpush2.msra.mxu0 %v464_v58  ;;  %v453_v6 = vld [vmem:[#allocation5 + $0xa08] sm:$0xff]  ;;  %v452_v8 = vld [vmem:[#allocation5 + $0xa00] sm:$0xff]  ;;  %v303_v37 = vld [vmem:[#allocation5 + $0x558] sm:$0xff] }
  0xd7   :  { %955 = vmatpush2.msra.mxu1 %v580_v59  ;;  %2122 = vmatprep.mubr.msk.f32.mxu1 %vm654_vm0, %v123_v60  ;;  %v121_v9 = vld [vmem:[#allocation2 + $0x28] sm:$0xff]  ;;  %v120_v11 = vld [vmem:[#allocation2 + $0x20] sm:$0xff]  ;;  %v162_v38 = vld [vmem:[#allocation5 + $0xf0] sm:$0xff] }
  0xd8   :  { %873 = vmatprep.subr.mxu0 %v461_v61  ;;  %957 = vmatmul.mubr.f32.vlgmr.msra.gmra.mxu1 %v122_v62  ;;  %v2478_v18 = vld [vmem:[#allocation2 + $0x68] sm:$0xff]  ;;  %v2480_v22 = vld [vmem:[#allocation2 + $0x60] sm:$0xff]  ;;  %v302_v39 = vld [vmem:[#allocation5 + $0x550] sm:$0xff] }
  0xd9   :  { %969 = vmatprep.subr.mxu1 %v195_v63  ;;  %874 = vmatpush2.msra.mxu0 %v460_v0  ;;  %v159_v40 = vld [vmem:[#allocation5 + $0xd8] sm:$0xff]  ;;  %v158_v42 = vld [vmem:[#allocation5 + $0xd0] sm:$0xff] }
  0xda   :  { %970 = vmatpush1.msra.mxu1 %v194_v1  ;;  %875 = vmatprep.subr.mxu0 %v457_v2  ;;  %v299_v41 = vld [vmem:[#allocation5 + $0x538] sm:$0xff]  ;;  %v298_v43 = vld [vmem:[#allocation5 + $0x530] sm:$0xff] }
  0xdb   :  { %971 = vmatprep.subr.mxu1 %v191_v3  ;;  %876 = vmatpush2.msra.mxu0 %v456_v4  ;;  %v155_v44 = vld [vmem:[#allocation5 + $0xb8] sm:$0xff]  ;;  %v154_v46 = vld [vmem:[#allocation5 + $0xb0] sm:$0xff] }
  0xdc   :  { %972 = vmatpush1.msra.mxu1 %v190_v5  ;;  %877 = vmatprep.subr.mxu0 %v453_v6  ;;  %v295_v45 = vld [vmem:[#allocation5 + $0x518] sm:$0xff]  ;;  %v294_v47 = vld [vmem:[#allocation5 + $0x510] sm:$0xff] }
  0xdd   :  { %973 = vmatprep.subr.mxu1 %v187_v7  ;;  %878 = vmatpush2.msra.mxu0 %v452_v8  ;;  %v151_v48 = vld [vmem:[#allocation5 + $0x98] sm:$0xff]  ;;  %v150_v50 = vld [vmem:[#allocation5 + $0x90] sm:$0xff] }
  0xde   :  { %879 = vmatprep.mubr.f32.mxu0 %v121_v9  ;;  %974 = vmatpush1.msra.mxu1 %v186_v10  ;;  %v291_v49 = vld [vmem:[#allocation5 + $0x4f8] sm:$0xff]  ;;  %v290_v51 = vld [vmem:[#allocation5 + $0x4f0] sm:$0xff] }
  0xdf   :  { %880 = vmatmul.mubr.f32.vlgmr.msra.gmra.mxu0 %v120_v11  ;;  %975 = vmatprep.subr.mxu1 %v183_v12  ;;  %v147_v52 = vld [vmem:[#allocation5 + $0x78] sm:$0xff]  ;;  %v146_v54 = vld [vmem:[#allocation5 + $0x70] sm:$0xff] }
  0xe0   :  { %1046 = vmatprep.subr.mxu0 %v323_v13  ;;  %976 = vmatpush1.msra.mxu1 %v182_v14  ;;  %v287_v53 = vld [vmem:[#allocation5 + $0x4d8] sm:$0xff]  ;;  %v286_v55 = vld [vmem:[#allocation5 + $0x4d0] sm:$0xff] }
  0xe1   :  { %1047 = vmatpush1.msra.mxu0 %v322_v15  ;;  %977 = vmatprep.subr.mxu1 %v179_v16  ;;  %v143_v56 = vld [vmem:[#allocation5 + $0x58] sm:$0xff]  ;;  %v142_v58 = vld [vmem:[#allocation5 + $0x50] sm:$0xff] }
  0xe2   :  { %1048 = vmatprep.subr.mxu0 %v319_v17  ;;  %885 = vmatprep.mubr.f32.mxu0 %v2478_v18  ;;  %v283_v57 = vld [vmem:[#allocation5 + $0x4b8] sm:$0xff]  ;;  %v282_v59 = vld [vmem:[#allocation5 + $0x4b0] sm:$0xff] }
  0xe3   :  { %978 = vmatpush1.msra.mxu1 %v178_v19  ;;  %1049 = vmatpush1.msra.mxu0 %v318_v20  ;;  %v139_v60 = vld [vmem:[#allocation5 + $0x38] sm:$0xff]  ;;  %v138_v62 = vld [vmem:[#allocation5 + $0x30] sm:$0xff] }
  0xe4   :  { %979 = vmatprep.subr.mxu1 %v175_v21  ;;  %886 = vmatmul.mubr.f32.gmra.mxu0 %v2480_v22  ;;  %v279_v61 = vld [vmem:[#allocation5 + $0x498] sm:$0xff]  ;;  %v278_v63 = vld [vmem:[#allocation5 + $0x490] sm:$0xff] }
  0xe5   :  { %1050 = vmatprep.subr.mxu0 %v315_v23  ;;  %2123 = vmatprep.mubr.msk.f32.mxu1 %vm654_vm0, %v2483_v24  ;;  %v135_v0 = vld [vmem:[#allocation5 + $0x18] sm:$0xff]  ;;  %v134_v2 = vld [vmem:[#allocation5 + $0x10] sm:$0xff] }
  0xe6   :  { %980 = vmatpush1.msra.mxu1 %v174_v25  ;;  %1051 = vmatpush1.msra.mxu0 %v314_v26  ;;  %v275_v1 = vld [vmem:[#allocation5 + $0x478] sm:$0xff]  ;;  %v274_v3 = vld [vmem:[#allocation5 + $0x470] sm:$0xff] }
  0xe7   :  { %963 = vmatmul.mubr.f32.gmra.mxu1 %v2485_v27  ;;  %981 = vmatprep.subr.mxu1 %v171_v28  ;;  %v259_v4 = vld [vmem:[#allocation5 + $0x3f8] sm:$0xff]  ;;  %v258_v6 = vld [vmem:[#allocation5 + $0x3f0] sm:$0xff] }
  0xe8   :  { %1052 = vmatprep.subr.mxu0 %v311_v29  ;;  %982 = vmatpush1.msra.mxu1 %v170_v30  ;;  %v271_v5 = vld [vmem:[#allocation5 + $0x458] sm:$0xff]  ;;  %v270_v7 = vld [vmem:[#allocation5 + $0x450] sm:$0xff] }
  0xe9   :  { %1053 = vmatpush1.msra.mxu0 %v310_v31  ;;  %983 = vmatprep.subr.mxu1 %v167_v32  ;;  %v255_v8 = vld [vmem:[#allocation5 + $0x3d8] sm:$0xff]  ;;  %v254_v10 = vld [vmem:[#allocation5 + $0x3d0] sm:$0xff] }
  0xea   :  { %1054 = vmatprep.subr.mxu0 %v307_v33  ;;  %984 = vmatpush1.msra.mxu1 %v166_v34  ;;  %v267_v9 = vld [vmem:[#allocation5 + $0x438] sm:$0xff]  ;;  %v266_v11 = vld [vmem:[#allocation5 + $0x430] sm:$0xff] }
  0xeb   :  { %1055 = vmatpush1.msra.mxu0 %v306_v35  ;;  %985 = vmatprep.subr.mxu1 %v163_v36  ;;  %v251_v12 = vld [vmem:[#allocation5 + $0x3b8] sm:$0xff]  ;;  %v250_v14 = vld [vmem:[#allocation5 + $0x3b0] sm:$0xff] }
  0xec   :  { %1056 = vmatprep.subr.mxu0 %v303_v37  ;;  %986 = vmatpush1.msra.mxu1 %v162_v38  ;;  %v263_v13 = vld [vmem:[#allocation5 + $0x418] sm:$0xff]  ;;  %v262_v15 = vld [vmem:[#allocation5 + $0x410] sm:$0xff] }
  0xed   :  { %1057 = vmatpush1.msra.mxu0 %v302_v39  ;;  %987 = vmatprep.subr.mxu1 %v159_v40  ;;  %v247_v16 = vld [vmem:[#allocation5 + $0x398] sm:$0xff]  ;;  %v246_v19 = vld [vmem:[#allocation5 + $0x390] sm:$0xff] }
  0xee   :  { %1058 = vmatprep.subr.mxu0 %v299_v41  ;;  %988 = vmatpush1.msra.mxu1 %v158_v42  ;;  %v387_v17 = vld [vmem:[#allocation5 + $0x7f8] sm:$0xff]  ;;  %v386_v20 = vld [vmem:[#allocation5 + $0x7f0] sm:$0xff] }
  0xef   :  { %1059 = vmatpush1.msra.mxu0 %v298_v43  ;;  %989 = vmatprep.subr.mxu1 %v155_v44  ;;  %v243_v21 = vld [vmem:[#allocation5 + $0x378] sm:$0xff]  ;;  %v242_v25 = vld [vmem:[#allocation5 + $0x370] sm:$0xff] }
  0xf0   :  { %1060 = vmatprep.subr.mxu0 %v295_v45  ;;  %990 = vmatpush1.msra.mxu1 %v154_v46  ;;  %v383_v23 = vld [vmem:[#allocation5 + $0x7d8] sm:$0xff]  ;;  %v382_v26 = vld [vmem:[#allocation5 + $0x7d0] sm:$0xff] }
  0xf1   :  { %1061 = vmatpush1.msra.mxu0 %v294_v47  ;;  %991 = vmatprep.subr.mxu1 %v151_v48  ;;  %v239_v28 = vld [vmem:[#allocation5 + $0x358] sm:$0xff]  ;;  %v238_v30 = vld [vmem:[#allocation5 + $0x350] sm:$0xff] }
  0xf2   :  { %1062 = vmatprep.subr.mxu0 %v291_v49  ;;  %992 = vmatpush1.msra.mxu1 %v150_v50  ;;  %v379_v29 = vld [vmem:[#allocation5 + $0x7b8] sm:$0xff]  ;;  %v378_v31 = vld [vmem:[#allocation5 + $0x7b0] sm:$0xff] }
  0xf3   :  { %1063 = vmatpush1.msra.mxu0 %v290_v51  ;;  %993 = vmatprep.subr.mxu1 %v147_v52  ;;  %v235_v32 = vld [vmem:[#allocation5 + $0x338] sm:$0xff]  ;;  %v234_v34 = vld [vmem:[#allocation5 + $0x330] sm:$0xff] }
  0xf4   :  { %1064 = vmatprep.subr.mxu0 %v287_v53  ;;  %994 = vmatpush1.msra.mxu1 %v146_v54  ;;  %v375_v33 = vld [vmem:[#allocation5 + $0x798] sm:$0xff]  ;;  %v374_v35 = vld [vmem:[#allocation5 + $0x790] sm:$0xff] }
  0xf5   :  { %1065 = vmatpush1.msra.mxu0 %v286_v55  ;;  %995 = vmatprep.subr.mxu1 %v143_v56  ;;  %v231_v36 = vld [vmem:[#allocation5 + $0x318] sm:$0xff]  ;;  %v230_v38 = vld [vmem:[#allocation5 + $0x310] sm:$0xff] }
  0xf6   :  { %1066 = vmatprep.subr.mxu0 %v283_v57  ;;  %996 = vmatpush1.msra.mxu1 %v142_v58  ;;  %v371_v37 = vld [vmem:[#allocation5 + $0x778] sm:$0xff]  ;;  %v370_v39 = vld [vmem:[#allocation5 + $0x770] sm:$0xff] }
  0xf7   :  { %1067 = vmatpush1.msra.mxu0 %v282_v59  ;;  %997 = vmatprep.subr.mxu1 %v139_v60  ;;  %v227_v40 = vld [vmem:[#allocation5 + $0x2f8] sm:$0xff]  ;;  %v226_v42 = vld [vmem:[#allocation5 + $0x2f0] sm:$0xff] }
  0xf8   :  { %1068 = vmatprep.subr.mxu0 %v279_v61  ;;  %998 = vmatpush1.msra.mxu1 %v138_v62  ;;  %v367_v41 = vld [vmem:[#allocation5 + $0x758] sm:$0xff]  ;;  %v366_v43 = vld [vmem:[#allocation5 + $0x750] sm:$0xff] }
  0xf9   :  { %1069 = vmatpush1.msra.mxu0 %v278_v63  ;;  %999 = vmatprep.subr.mxu1 %v135_v0  ;;  %v223_v44 = vld [vmem:[#allocation5 + $0x2d8] sm:$0xff]  ;;  %v222_v46 = vld [vmem:[#allocation5 + $0x2d0] sm:$0xff] }
  0xfa   :  { %1070 = vmatprep.subr.mxu0 %v275_v1  ;;  %1000 = vmatpush1.msra.mxu1 %v134_v2  ;;  %v363_v45 = vld [vmem:[#allocation5 + $0x738] sm:$0xff]  ;;  %v362_v47 = vld [vmem:[#allocation5 + $0x730] sm:$0xff] }
  0xfb   :  { %1071 = vmatpush1.msra.mxu0 %v274_v3  ;;  %1001 = vmatprep.subr.mxu1 %v259_v4  ;;  %v219_v48 = vld [vmem:[#allocation5 + $0x2b8] sm:$0xff]  ;;  %v218_v50 = vld [vmem:[#allocation5 + $0x2b0] sm:$0xff] }
  0xfc   :  { %1072 = vmatprep.subr.mxu0 %v271_v5  ;;  %1002 = vmatpush2.msra.mxu1 %v258_v6  ;;  %v359_v49 = vld [vmem:[#allocation5 + $0x718] sm:$0xff]  ;;  %v358_v51 = vld [vmem:[#allocation5 + $0x710] sm:$0xff] }
  0xfd   :  { %1073 = vmatpush1.msra.mxu0 %v270_v7  ;;  %1003 = vmatprep.subr.mxu1 %v255_v8  ;;  %v215_v52 = vld [vmem:[#allocation5 + $0x298] sm:$0xff]  ;;  %v214_v54 = vld [vmem:[#allocation5 + $0x290] sm:$0xff] }
  0xfe   :  { %1074 = vmatprep.subr.mxu0 %v267_v9  ;;  %1004 = vmatpush2.msra.mxu1 %v254_v10  ;;  %v355_v53 = vld [vmem:[#allocation5 + $0x6f8] sm:$0xff]  ;;  %v354_v55 = vld [vmem:[#allocation5 + $0x6f0] sm:$0xff]  ;;  %v2217_v10 = vld [vmem:[#allocation2 + $0x8] sm:$0xff] }
  0xff   :  { %1075 = vmatpush1.msra.mxu0 %v266_v11  ;;  %1005 = vmatprep.subr.mxu1 %v251_v12  ;;  %v211_v56 = vld [vmem:[#allocation5 + $0x278] sm:$0xff]  ;;  %v210_v58 = vld [vmem:[#allocation5 + $0x270] sm:$0xff] }
 0x100   :  { %1076 = vmatprep.subr.mxu0 %v263_v13  ;;  %1006 = vmatpush2.msra.mxu1 %v250_v14  ;;  %v351_v57 = vld [vmem:[#allocation5 + $0x6d8] sm:$0xff]  ;;  %v350_v59 = vld [vmem:[#allocation5 + $0x6d0] sm:$0xff]  ;;  %v2218_v13 = vld [vmem:[#allocation2] sm:$0xff] }
 0x101   :  { %1077 = vmatpush1.msra.mxu0 %v262_v15  ;;  %1007 = vmatprep.subr.mxu1 %v247_v16  ;;  %v207_v60 = vld [vmem:[#allocation5 + $0x258] sm:$0xff]  ;;  %v206_v62 = vld [vmem:[#allocation5 + $0x250] sm:$0xff] }
 0x102   :  { %1078 = vmatprep.subr.mxu0 %v387_v17  ;;  %1008 = vmatpush2.msra.mxu1 %v246_v19  ;;  %v347_v61 = vld [vmem:[#allocation5 + $0x6b8] sm:$0xff]  ;;  %v346_v63 = vld [vmem:[#allocation5 + $0x6b0] sm:$0xff] }
 0x103   :  { %1079 = vmatpush2.msra.mxu0 %v386_v20  ;;  %1009 = vmatprep.subr.mxu1 %v243_v21  ;;  %v203_v0 = vld [vmem:[#allocation5 + $0x238] sm:$0xff]  ;;  %v202_v2 = vld [vmem:[#allocation5 + $0x230] sm:$0xff] }
 0x104   :  { %1080 = vmatprep.subr.mxu0 %v383_v23  ;;  %1010 = vmatpush2.msra.mxu1 %v242_v25  ;;  %v343_v1 = vld [vmem:[#allocation5 + $0x698] sm:$0xff]  ;;  %v342_v3 = vld [vmem:[#allocation5 + $0x690] sm:$0xff] }
 0x105   :  { %1081 = vmatpush2.msra.mxu0 %v382_v26  ;;  %1011 = vmatprep.subr.mxu1 %v239_v28  ;;  %v199_v4 = vld [vmem:[#allocation5 + $0x218] sm:$0xff]  ;;  %v198_v6 = vld [vmem:[#allocation5 + $0x210] sm:$0xff] }
 0x106   :  { %1082 = vmatprep.subr.mxu0 %v379_v29  ;;  %1012 = vmatpush2.msra.mxu1 %v238_v30  ;;  %v339_v5 = vld [vmem:[#allocation5 + $0x678] sm:$0xff]  ;;  %v338_v7 = vld [vmem:[#allocation5 + $0x670] sm:$0xff] }
 0x107   :  { %1083 = vmatpush2.msra.mxu0 %v378_v31  ;;  %1013 = vmatprep.subr.mxu1 %v235_v32  ;;  %v335_v8 = vld [vmem:[#allocation5 + $0x658] sm:$0xff]  ;;  %v334_v11 = vld [vmem:[#allocation5 + $0x650] sm:$0xff] }
 0x108   :  { %1084 = vmatprep.subr.mxu0 %v375_v33  ;;  %1014 = vmatpush2.msra.mxu1 %v234_v34  ;;  %v451_v9 = vld [vmem:[#allocation5 + $0x9f8] sm:$0xff]  ;;  %v450_v12 = vld [vmem:[#allocation5 + $0x9f0] sm:$0xff] }
 0x109   :  { %1085 = vmatpush2.msra.mxu0 %v374_v35  ;;  %1015 = vmatprep.subr.mxu1 %v231_v36  ;;  %v331_v14 = vld [vmem:[#allocation5 + $0x638] sm:$0xff]  ;;  %v330_v16 = vld [vmem:[#allocation5 + $0x630] sm:$0xff] }
 0x10a   :  { %1086 = vmatprep.subr.mxu0 %v371_v37  ;;  %1016 = vmatpush2.msra.mxu1 %v230_v38  ;;  %v447_v15 = vld [vmem:[#allocation5 + $0x9d8] sm:$0xff]  ;;  %v446_v17 = vld [vmem:[#allocation5 + $0x9d0] sm:$0xff] }
 0x10b   :  { %1087 = vmatpush2.msra.mxu0 %v370_v39  ;;  %1017 = vmatprep.subr.mxu1 %v227_v40  ;;  %v327_v19 = vld [vmem:[#allocation5 + $0x618] sm:$0xff]  ;;  %v326_v21 = vld [vmem:[#allocation5 + $0x610] sm:$0xff] }
 0x10c   :  { %1088 = vmatprep.subr.mxu0 %v367_v41  ;;  %1018 = vmatpush2.msra.mxu1 %v226_v42  ;;  %v443_v20 = vld [vmem:[#allocation5 + $0x9b8] sm:$0xff]  ;;  %v442_v23 = vld [vmem:[#allocation5 + $0x9b0] sm:$0xff] }
 0x10d   :  { %1089 = vmatpush2.msra.mxu0 %v366_v43  ;;  %1019 = vmatprep.subr.mxu1 %v223_v44  ;;  %v439_v25 = vld [vmem:[#allocation5 + $0x998] sm:$0xff]  ;;  %v438_v29 = vld [vmem:[#allocation5 + $0x990] sm:$0xff] }
 0x10e   :  { %1090 = vmatprep.subr.mxu0 %v363_v45  ;;  %1020 = vmatpush2.msra.mxu1 %v222_v46  ;;  %v579_v26 = vld [vmem:[#allocation5 + $0xdf8] sm:$0xff]  ;;  %v578_v30 = vld [vmem:[#allocation5 + $0xdf0] sm:$0xff] }
 0x10f   :  { %1091 = vmatpush2.msra.mxu0 %v362_v47  ;;  %1021 = vmatprep.subr.mxu1 %v219_v48  ;;  %v2219_v28 = vld [vmem:[#allocation2 + $0x18] sm:$0xff]  ;;  %v2220_v31 = vld [vmem:[#allocation2 + $0x10] sm:$0xff] }
 0x110   :  { %1092 = vmatprep.subr.mxu0 %v359_v49  ;;  %1022 = vmatpush2.msra.mxu1 %v218_v50  ;;  %v435_v32 = vld [vmem:[#allocation5 + $0x978] sm:$0xff]  ;;  %v434_v34 = vld [vmem:[#allocation5 + $0x970] sm:$0xff] }
 0x111   :  { %1093 = vmatpush2.msra.mxu0 %v358_v51  ;;  %1023 = vmatprep.subr.mxu1 %v215_v52  ;;  %v575_v33 = vld [vmem:[#allocation5 + $0xdd8] sm:$0xff]  ;;  %v574_v35 = vld [vmem:[#allocation5 + $0xdd0] sm:$0xff] }
 0x112   :  { %1094 = vmatprep.subr.mxu0 %v355_v53  ;;  %1024 = vmatpush2.msra.mxu1 %v214_v54  ;;  %v431_v36 = vld [vmem:[#allocation5 + $0x958] sm:$0xff]  ;;  %v430_v38 = vld [vmem:[#allocation5 + $0x950] sm:$0xff] }
 0x113   :  { %1095 = vmatpush2.msra.mxu0 %v354_v55  ;;  %1025 = vmatprep.subr.mxu1 %v211_v56  ;;  %v571_v37 = vld [vmem:[#allocation5 + $0xdb8] sm:$0xff]  ;;  %v570_v39 = vld [vmem:[#allocation5 + $0xdb0] sm:$0xff] }
 0x114   :  { %1096 = vmatprep.subr.mxu0 %v351_v57  ;;  %1026 = vmatpush2.msra.mxu1 %v210_v58  ;;  %v427_v40 = vld [vmem:[#allocation5 + $0x938] sm:$0xff]  ;;  %v426_v42 = vld [vmem:[#allocation5 + $0x930] sm:$0xff] }
 0x115   :  { %1097 = vmatpush2.msra.mxu0 %v350_v59  ;;  %1027 = vmatprep.subr.mxu1 %v207_v60  ;;  %v567_v41 = vld [vmem:[#allocation5 + $0xd98] sm:$0xff]  ;;  %v566_v43 = vld [vmem:[#allocation5 + $0xd90] sm:$0xff] }
 0x116   :  { %1098 = vmatprep.subr.mxu0 %v347_v61  ;;  %1028 = vmatpush2.msra.mxu1 %v206_v62  ;;  %v423_v44 = vld [vmem:[#allocation5 + $0x918] sm:$0xff]  ;;  %v422_v46 = vld [vmem:[#allocation5 + $0x910] sm:$0xff] }
 0x117   :  { %1099 = vmatpush2.msra.mxu0 %v346_v63  ;;  %1029 = vmatprep.subr.mxu1 %v203_v0  ;;  %v563_v45 = vld [vmem:[#allocation5 + $0xd78] sm:$0xff]  ;;  %v562_v47 = vld [vmem:[#allocation5 + $0xd70] sm:$0xff] }
 0x118   :  { %1100 = vmatprep.subr.mxu0 %v343_v1  ;;  %1030 = vmatpush2.msra.mxu1 %v202_v2  ;;  %v419_v48 = vld [vmem:[#allocation5 + $0x8f8] sm:$0xff]  ;;  %v418_v50 = vld [vmem:[#allocation5 + $0x8f0] sm:$0xff] }
 0x119   :  { %1101 = vmatpush2.msra.mxu0 %v342_v3  ;;  %1031 = vmatprep.subr.mxu1 %v199_v4  ;;  %v559_v49 = vld [vmem:[#allocation5 + $0xd58] sm:$0xff]  ;;  %v558_v51 = vld [vmem:[#allocation5 + $0xd50] sm:$0xff] }
 0x11a   :  { %1102 = vmatprep.subr.mxu0 %v339_v5  ;;  %1032 = vmatpush2.msra.mxu1 %v198_v6  ;;  %v415_v52 = vld [vmem:[#allocation5 + $0x8d8] sm:$0xff]  ;;  %v414_v54 = vld [vmem:[#allocation5 + $0x8d0] sm:$0xff] }
 0x11b   :  { %1033 = vmatprep.mubr.f32.mxu1 %v2217_v10  ;;  %1103 = vmatpush2.msra.mxu0 %v338_v7  ;;  %v555_v53 = vld [vmem:[#allocation5 + $0xd38] sm:$0xff]  ;;  %v554_v55 = vld [vmem:[#allocation5 + $0xd30] sm:$0xff] }
 0x11c   :  { %1034 = vmatmul.mubr.f32.vlgmr.msra.gmra.mxu1 %v2218_v13  ;;  %1104 = vmatprep.subr.mxu0 %v335_v8  ;;  %v411_v56 = vld [vmem:[#allocation5 + $0x8b8] sm:$0xff]  ;;  %v410_v58 = vld [vmem:[#allocation5 + $0x8b0] sm:$0xff] }
 0x11d   :  { %1123 = vmatprep.subr.mxu1 %v451_v9  ;;  %1105 = vmatpush2.msra.mxu0 %v334_v11  ;;  %v551_v57 = vld [vmem:[#allocation5 + $0xd18] sm:$0xff]  ;;  %v550_v59 = vld [vmem:[#allocation5 + $0xd10] sm:$0xff] }
 0x11e   :  { %1124 = vmatpush1.msra.mxu1 %v450_v12  ;;  %1106 = vmatprep.subr.mxu0 %v331_v14  ;;  %v407_v60 = vld [vmem:[#allocation5 + $0x898] sm:$0xff]  ;;  %v406_v62 = vld [vmem:[#allocation5 + $0x890] sm:$0xff] }
 0x11f   :  { %1125 = vmatprep.subr.mxu1 %v447_v15  ;;  %1107 = vmatpush2.msra.mxu0 %v330_v16  ;;  %v547_v61 = vld [vmem:[#allocation5 + $0xcf8] sm:$0xff]  ;;  %v546_v63 = vld [vmem:[#allocation5 + $0xcf0] sm:$0xff] }
 0x120   :  { %1126 = vmatpush1.msra.mxu1 %v446_v17  ;;  %1108 = vmatprep.subr.mxu0 %v327_v19  ;;  %v403_v0 = vld [vmem:[#allocation5 + $0x878] sm:$0xff]  ;;  %v402_v2 = vld [vmem:[#allocation5 + $0x870] sm:$0xff] }
 0x121   :  { %1127 = vmatprep.subr.mxu1 %v443_v20  ;;  %1109 = vmatpush2.msra.mxu0 %v326_v21  ;;  %v543_v1 = vld [vmem:[#allocation5 + $0xcd8] sm:$0xff]  ;;  %v542_v3 = vld [vmem:[#allocation5 + $0xcd0] sm:$0xff] }
 0x122   :  { %1110 = vmatprep.mubr.f32.mxu0 %v2219_v28  ;;  %1128 = vmatpush1.msra.mxu1 %v442_v23  ;;  %v399_v4 = vld [vmem:[#allocation5 + $0x858] sm:$0xff]  ;;  %v398_v6 = vld [vmem:[#allocation5 + $0x850] sm:$0xff] }
 0x123   :  { %1111 = vmatmul.mubr.f32.vlgmr.msra.gmra.mxu0 %v2220_v31  ;;  %1129 = vmatprep.subr.mxu1 %v439_v25  ;;  %v539_v5 = vld [vmem:[#allocation5 + $0xcb8] sm:$0xff]  ;;  %v538_v7 = vld [vmem:[#allocation5 + $0xcb0] sm:$0xff] }
 0x124   :  { %1200 = vmatprep.subr.mxu0 %v579_v26  ;;  %1130 = vmatpush1.msra.mxu1 %v438_v29  ;;  %v395_v8 = vld [vmem:[#allocation5 + $0x838] sm:$0xff]  ;;  %v394_v10 = vld [vmem:[#allocation5 + $0x830] sm:$0xff] }
 0x125   :  { %1201 = vmatpush1.msra.mxu0 %v578_v30  ;;  %1131 = vmatprep.subr.mxu1 %v435_v32  ;;  %v535_v9 = vld [vmem:[#allocation5 + $0xc98] sm:$0xff]  ;;  %v534_v11 = vld [vmem:[#allocation5 + $0xc90] sm:$0xff] }
 0x126   :  { %1202 = vmatprep.subr.mxu0 %v575_v33  ;;  %1132 = vmatpush1.msra.mxu1 %v434_v34  ;;  %v391_v12 = vld [vmem:[#allocation5 + $0x818] sm:$0xff]  ;;  %v390_v14 = vld [vmem:[#allocation5 + $0x810] sm:$0xff] }
 0x127   :  { %1203 = vmatpush1.msra.mxu0 %v574_v35  ;;  %1133 = vmatprep.subr.mxu1 %v431_v36  ;;  %v531_v13 = vld [vmem:[#allocation5 + $0xc78] sm:$0xff]  ;;  %v530_v15 = vld [vmem:[#allocation5 + $0xc70] sm:$0xff] }
 0x128   :  { %1204 = vmatprep.subr.mxu0 %v571_v37  ;;  %1134 = vmatpush1.msra.mxu1 %v430_v38  ;;  %v515_v16 = vld [vmem:[#allocation5 + $0xbf8] sm:$0xff]  ;;  %v514_v19 = vld [vmem:[#allocation5 + $0xbf0] sm:$0xff] }
 0x129   :  { %1205 = vmatpush1.msra.mxu0 %v570_v39  ;;  %1135 = vmatprep.subr.mxu1 %v427_v40  ;;  %v527_v17 = vld [vmem:[#allocation5 + $0xc58] sm:$0xff]  ;;  %v526_v20 = vld [vmem:[#allocation5 + $0xc50] sm:$0xff] }
 0x12a   :  { %1206 = vmatprep.subr.mxu0 %v567_v41  ;;  %1136 = vmatpush1.msra.mxu1 %v426_v42  ;;  %v511_v21 = vld [vmem:[#allocation5 + $0xbd8] sm:$0xff]  ;;  %v510_v25 = vld [vmem:[#allocation5 + $0xbd0] sm:$0xff] }
 0x12b   :  { %1207 = vmatpush1.msra.mxu0 %v566_v43  ;;  %1137 = vmatprep.subr.mxu1 %v423_v44  ;;  %v523_v23 = vld [vmem:[#allocation5 + $0xc38] sm:$0xff]  ;;  %v522_v26 = vld [vmem:[#allocation5 + $0xc30] sm:$0xff] }
 0x12c   :  { %1208 = vmatprep.subr.mxu0 %v563_v45  ;;  %1138 = vmatpush1.msra.mxu1 %v422_v46  ;;  %v507_v28 = vld [vmem:[#allocation5 + $0xbb8] sm:$0xff]  ;;  %v506_v30 = vld [vmem:[#allocation5 + $0xbb0] sm:$0xff] }
 0x12d   :  { %1209 = vmatpush1.msra.mxu0 %v562_v47  ;;  %1139 = vmatprep.subr.mxu1 %v419_v48  ;;  %v519_v29 = vld [vmem:[#allocation5 + $0xc18] sm:$0xff]  ;;  %v518_v31 = vld [vmem:[#allocation5 + $0xc10] sm:$0xff] }
 0x12e   :  { %1210 = vmatprep.subr.mxu0 %v559_v49  ;;  %1140 = vmatpush1.msra.mxu1 %v418_v50  ;;  %v503_v32 = vld [vmem:[#allocation5 + $0xb98] sm:$0xff]  ;;  %v502_v34 = vld [vmem:[#allocation5 + $0xb90] sm:$0xff] }
 0x12f   :  { %1211 = vmatpush1.msra.mxu0 %v558_v51  ;;  %1141 = vmatprep.subr.mxu1 %v415_v52  ;;  %v631_v33 = vld [vmem:[#allocation5 + $0xf98] sm:$0xff]  ;;  %v630_v35 = vld [vmem:[#allocation5 + $0xf90] sm:$0xff] }
 0x130   :  { %1212 = vmatprep.subr.mxu0 %v555_v53  ;;  %1142 = vmatpush1.msra.mxu1 %v414_v54  ;;  %v499_v36 = vld [vmem:[#allocation5 + $0xb78] sm:$0xff]  ;;  %v498_v38 = vld [vmem:[#allocation5 + $0xb70] sm:$0xff] }
 0x131   :  { %1213 = vmatpush1.msra.mxu0 %v554_v55  ;;  %1143 = vmatprep.subr.mxu1 %v411_v56  ;;  %v627_v37 = vld [vmem:[#allocation5 + $0xf78] sm:$0xff]  ;;  %v626_v39 = vld [vmem:[#allocation5 + $0xf70] sm:$0xff] }
 0x132   :  { %1214 = vmatprep.subr.mxu0 %v551_v57  ;;  %1144 = vmatpush1.msra.mxu1 %v410_v58  ;;  %v495_v40 = vld [vmem:[#allocation5 + $0xb58] sm:$0xff]  ;;  %v494_v42 = vld [vmem:[#allocation5 + $0xb50] sm:$0xff] }
 0x133   :  { %1215 = vmatpush1.msra.mxu0 %v550_v59  ;;  %1145 = vmatprep.subr.mxu1 %v407_v60  ;;  %v623_v41 = vld [vmem:[#allocation5 + $0xf58] sm:$0xff]  ;;  %v622_v43 = vld [vmem:[#allocation5 + $0xf50] sm:$0xff] }
 0x134   :  { %1216 = vmatprep.subr.mxu0 %v547_v61  ;;  %1146 = vmatpush1.msra.mxu1 %v406_v62  ;;  %v491_v44 = vld [vmem:[#allocation5 + $0xb38] sm:$0xff]  ;;  %v490_v46 = vld [vmem:[#allocation5 + $0xb30] sm:$0xff] }
 0x135   :  { %1217 = vmatpush1.msra.mxu0 %v546_v63  ;;  %1147 = vmatprep.subr.mxu1 %v403_v0  ;;  %v619_v45 = vld [vmem:[#allocation5 + $0xf38] sm:$0xff]  ;;  %v618_v47 = vld [vmem:[#allocation5 + $0xf30] sm:$0xff] }
 0x136   :  { %1218 = vmatprep.subr.mxu0 %v543_v1  ;;  %1148 = vmatpush1.msra.mxu1 %v402_v2  ;;  %v487_v48 = vld [vmem:[#allocation5 + $0xb18] sm:$0xff]  ;;  %v486_v50 = vld [vmem:[#allocation5 + $0xb10] sm:$0xff] }
 0x137   :  { %1219 = vmatpush1.msra.mxu0 %v542_v3  ;;  %1149 = vmatprep.subr.mxu1 %v399_v4  ;;  %v615_v49 = vld [vmem:[#allocation5 + $0xf18] sm:$0xff]  ;;  %v614_v51 = vld [vmem:[#allocation5 + $0xf10] sm:$0xff] }
 0x138   :  { %1220 = vmatprep.subr.mxu0 %v539_v5  ;;  %1150 = vmatpush1.msra.mxu1 %v398_v6  ;;  %v483_v52 = vld [vmem:[#allocation5 + $0xaf8] sm:$0xff]  ;;  %v482_v54 = vld [vmem:[#allocation5 + $0xaf0] sm:$0xff] }
 0x139   :  { %1221 = vmatpush1.msra.mxu0 %v538_v7  ;;  %1151 = vmatprep.subr.mxu1 %v395_v8  ;;  %v611_v53 = vld [vmem:[#allocation5 + $0xef8] sm:$0xff]  ;;  %v610_v55 = vld [vmem:[#allocation5 + $0xef0] sm:$0xff] }
 0x13a   :  { %1222 = vmatprep.subr.mxu0 %v535_v9  ;;  %1152 = vmatpush1.msra.mxu1 %v394_v10  ;;  %v479_v56 = vld [vmem:[#allocation5 + $0xad8] sm:$0xff]  ;;  %v478_v58 = vld [vmem:[#allocation5 + $0xad0] sm:$0xff]  ;;  %v2221_v10 = vld [vmem:[#allocation2 + $0x48] sm:$0xff] }
 0x13b   :  { %1223 = vmatpush1.msra.mxu0 %v534_v11  ;;  %1153 = vmatprep.subr.mxu1 %v391_v12  ;;  %v607_v57 = vld [vmem:[#allocation5 + $0xed8] sm:$0xff]  ;;  %v606_v59 = vld [vmem:[#allocation5 + $0xed0] sm:$0xff]  ;;  %v2222_v12 = vld [vmem:[#allocation2 + $0x40] sm:$0xff] }
 0x13c   :  { %1224 = vmatprep.subr.mxu0 %v531_v13  ;;  %1154 = vmatpush1.msra.mxu1 %v390_v14  ;;  %v475_v60 = vld [vmem:[#allocation5 + $0xab8] sm:$0xff]  ;;  %v474_v62 = vld [vmem:[#allocation5 + $0xab0] sm:$0xff] }
 0x13d   :  { %1225 = vmatpush1.msra.mxu0 %v530_v15  ;;  %1155 = vmatprep.subr.mxu1 %v515_v16  ;;  %v603_v61 = vld [vmem:[#allocation5 + $0xeb8] sm:$0xff]  ;;  %v602_v63 = vld [vmem:[#allocation5 + $0xeb0] sm:$0xff] }
 0x13e   :  { %1226 = vmatprep.subr.mxu0 %v527_v17  ;;  %1156 = vmatpush2.msra.mxu1 %v514_v19  ;;  %v471_v0 = vld [vmem:[#allocation5 + $0xa98] sm:$0xff]  ;;  %v470_v2 = vld [vmem:[#allocation5 + $0xa90] sm:$0xff] }
 0x13f   :  { %1227 = vmatpush1.msra.mxu0 %v526_v20  ;;  %1157 = vmatprep.subr.mxu1 %v511_v21  ;;  %v599_v1 = vld [vmem:[#allocation5 + $0xe98] sm:$0xff]  ;;  %v598_v3 = vld [vmem:[#allocation5 + $0xe90] sm:$0xff] }
 0x140   :  { %1228 = vmatprep.subr.mxu0 %v523_v23  ;;  %1158 = vmatpush2.msra.mxu1 %v510_v25  ;;  %v467_v4 = vld [vmem:[#allocation5 + $0xa78] sm:$0xff]  ;;  %v466_v6 = vld [vmem:[#allocation5 + $0xa70] sm:$0xff] }
 0x141   :  { %1229 = vmatpush1.msra.mxu0 %v522_v26  ;;  %1159 = vmatprep.subr.mxu1 %v507_v28  ;;  %v595_v5 = vld [vmem:[#allocation5 + $0xe78] sm:$0xff]  ;;  %v594_v7 = vld [vmem:[#allocation5 + $0xe70] sm:$0xff]  ;;  %v2225_v28 = vld [vmem:[#allocation2 + $0x28] sm:$0xff] }
 0x142   :  { %1230 = vmatprep.subr.mxu0 %v519_v29  ;;  %1160 = vmatpush2.msra.mxu1 %v506_v30  ;;  %v463_v8 = vld [vmem:[#allocation5 + $0xa58] sm:$0xff]  ;;  %v462_v11 = vld [vmem:[#allocation5 + $0xa50] sm:$0xff] }
 0x143   :  { %1231 = vmatpush1.msra.mxu0 %v518_v31  ;;  %1161 = vmatprep.subr.mxu1 %v503_v32  ;;  %v591_v9 = vld [vmem:[#allocation5 + $0xe58] sm:$0xff]  ;;  %v590_v13 = vld [vmem:[#allocation5 + $0xe50] sm:$0xff]  ;;  %v2227_v31 = vld [vmem:[#allocation2 + $0x20] sm:$0xff] }
 0x144   :  { %1238 = vmatprep.subr.mxu0 %v631_v33  ;;  %1162 = vmatpush2.msra.mxu1 %v502_v34  ;;  %v459_v14 = vld [vmem:[#allocation5 + $0xa38] sm:$0xff]  ;;  %v458_v17 = vld [vmem:[#allocation5 + $0xa30] sm:$0xff]  ;;  %v1345_v33 = vld [vmem:[#allocation8 + $0x1e0] sm:$0xff] }
 0x145   :  { %1239 = vmatpush2.msra.mxu0 %v630_v35  ;;  %1163 = vmatprep.subr.mxu1 %v499_v36  ;;  %v587_v15 = vld [vmem:[#allocation5 + $0xe38] sm:$0xff]  ;;  %v586_v19 = vld [vmem:[#allocation5 + $0xe30] sm:$0xff]  ;;  %v1341_v35 = vld [vmem:[#allocation8 + $0x1c0] sm:$0xff] }
 0x146   :  { %1240 = vmatprep.subr.mxu0 %v627_v37  ;;  %1164 = vmatpush2.msra.mxu1 %v498_v38  ;;  %v2223_v16 = vld [vmem:[#allocation2 + $0x58] sm:$0xff]  ;;  %v2224_v23 = vld [vmem:[#allocation2 + $0x50] sm:$0xff]  ;;  %v1337_v37 = vld [vmem:[#allocation8 + $0x1a0] sm:$0xff] }
 0x147   :  { %1241 = vmatpush2.msra.mxu0 %v626_v39  ;;  %1165 = vmatprep.subr.mxu1 %v495_v40  ;;  %v455_v20 = vld [vmem:[#allocation5 + $0xa18] sm:$0xff]  ;;  %v454_v25 = vld [vmem:[#allocation5 + $0xa10] sm:$0xff]  ;;  %v1473_v40 = vld [vmem:[#allocation8 + $0x5e0] sm:$0xff] }
 0x148   :  { %1242 = vmatprep.subr.mxu0 %v623_v41  ;;  %1166 = vmatpush2.msra.mxu1 %v494_v42  ;;  %v583_v21 = vld [vmem:[#allocation5 + $0xe18] sm:$0xff]  ;;  %v582_v26 = vld [vmem:[#allocation5 + $0xe10] sm:$0xff]  ;;  %v1333_v41 = vld [vmem:[#allocation8 + $0x180] sm:$0xff] }
 0x149   :  { %1243 = vmatpush2.msra.mxu0 %v622_v43  ;;  %1167 = vmatprep.subr.mxu1 %v491_v44  ;;  %v2226_v29 = vld [vmem:[#allocation2 + $0x38] sm:$0xff]  ;;  %v1346_v30 = vld [vmem:[#allocation8 + $0x1e8] sm:$0xff] }
 0x14a   :  { %1244 = vmatprep.subr.mxu0 %v619_v45  ;;  %1168 = vmatpush2.msra.mxu1 %v490_v46  ;;  %v2228_v32 = vld [vmem:[#allocation2 + $0x30] sm:$0xff]  ;;  %v1461_v46 = vld [vmem:[#allocation8 + $0x580] sm:$0xff] }
 0x14b   :  { %1245 = vmatpush2.msra.mxu0 %v618_v47  ;;  %1169 = vmatprep.subr.mxu1 %v487_v48  ;;  %v1342_v34 = vld [vmem:[#allocation8 + $0x1c8] sm:$0xff]  ;;  %v1325_v47 = vld [vmem:[#allocation8 + $0x140] sm:$0xff] }
 0x14c   :  { %1246 = vmatprep.subr.mxu0 %v615_v49  ;;  %1170 = vmatpush2.msra.mxu1 %v486_v50  ;;  %v1338_v36 = vld [vmem:[#allocation8 + $0x1a8] sm:$0xff]  ;;  %v1457_v50 = vld [vmem:[#allocation8 + $0x560] sm:$0xff] }
 0x14d   :  { %1247 = vmatpush2.msra.mxu0 %v614_v51  ;;  %1171 = vmatprep.subr.mxu1 %v483_v52  ;;  %v1474_v38 = vld [vmem:[#allocation8 + $0x5e8] sm:$0xff]  ;;  %v1321_v51 = vld [vmem:[#allocation8 + $0x120] sm:$0xff] }
 0x14e   :  { %1248 = vmatprep.subr.mxu0 %v611_v53  ;;  %1172 = vmatpush2.msra.mxu1 %v482_v54  ;;  %v1334_v39 = vld [vmem:[#allocation8 + $0x188] sm:$0xff]  ;;  %v1453_v54 = vld [vmem:[#allocation8 + $0x540] sm:$0xff] }
 0x14f   :  { %1249 = vmatpush2.msra.mxu0 %v610_v55  ;;  %1173 = vmatprep.subr.mxu1 %v479_v56  ;;  %v1330_v42 = vld [vmem:[#allocation8 + $0x168] sm:$0xff]  ;;  %v1317_v55 = vld [vmem:[#allocation8 + $0x100] sm:$0xff] }
 0x150   :  { %1250 = vmatprep.subr.mxu0 %v607_v57  ;;  %1174 = vmatpush2.msra.mxu1 %v478_v58  ;;  %v1466_v43 = vld [vmem:[#allocation8 + $0x5a8] sm:$0xff]  ;;  %v1449_v58 = vld [vmem:[#allocation8 + $0x520] sm:$0xff] }
 0x151   :  { %1251 = vmatpush2.msra.mxu0 %v606_v59  ;;  %1175 = vmatprep.subr.mxu1 %v475_v60  ;;  %v1462_v44 = vld [vmem:[#allocation8 + $0x588] sm:$0xff]  ;;  %v1313_v59 = vld [vmem:[#allocation8 + $0xe0] sm:$0xff] }
 0x152   :  { %1252 = vmatprep.subr.mxu0 %v603_v61  ;;  %1176 = vmatpush2.msra.mxu1 %v474_v62  ;;  %v1326_v45 = vld [vmem:[#allocation8 + $0x148] sm:$0xff]  ;;  %v1445_v62 = vld [vmem:[#allocation8 + $0x500] sm:$0xff] }
 0x153   :  { %1253 = vmatpush2.msra.mxu0 %v602_v63  ;;  %1177 = vmatprep.subr.mxu1 %v471_v0  ;;  %v1458_v48 = vld [vmem:[#allocation8 + $0x568] sm:$0xff]  ;;  %v1309_v63 = vld [vmem:[#allocation8 + $0xc0] sm:$0xff] }
 0x154   :  { %1254 = vmatprep.subr.mxu0 %v599_v1  ;;  %1178 = vmatpush2.msra.mxu1 %v470_v2  ;;  %v1322_v49 = vld [vmem:[#allocation8 + $0x128] sm:$0xff]  ;;  %v1441_v2 = vld [vmem:[#allocation8 + $0x4e0] sm:$0xff] }
 0x155   :  { %1255 = vmatpush2.msra.mxu0 %v598_v3  ;;  %1179 = vmatprep.subr.mxu1 %v467_v4  ;;  %v1454_v52 = vld [vmem:[#allocation8 + $0x548] sm:$0xff]  ;;  %v1305_v3 = vld [vmem:[#allocation8 + $0xa0] sm:$0xff] }
 0x156   :  { %1256 = vmatprep.subr.mxu0 %v595_v5  ;;  %1039 = vmatprep.mubr.f32.mxu1 %v2221_v10  ;;  %v1318_v53 = vld [vmem:[#allocation8 + $0x108] sm:$0xff]  ;;  %v1433_v10 = vld [vmem:[#allocation8 + $0x4a0] sm:$0xff] }
 0x157   :  { %1180 = vmatpush2.msra.mxu1 %v466_v6  ;;  %1257 = vmatpush2.msra.mxu0 %v594_v7  ;;  %v1450_v56 = vld [vmem:[#allocation8 + $0x528] sm:$0xff]  ;;  %v1437_v6 = vld [vmem:[#allocation8 + $0x4c0] sm:$0xff] }
 0x158   :  { %1040 = vmatmul.mubr.f32.gmra.mxu1 %v2222_v12  ;;  %1181 = vmatprep.subr.mxu1 %v463_v8  ;;  %v1314_v57 = vld [vmem:[#allocation8 + $0xe8] sm:$0xff]  ;;  %v1301_v7 = vld [vmem:[#allocation8 + $0x80] sm:$0xff] }
 0x159   :  { %1258 = vmatprep.subr.mxu0 %v591_v9  ;;  %1116 = vmatprep.mubr.f32.mxu0 %v2223_v16  ;;  %v1446_v60 = vld [vmem:[#allocation8 + $0x508] sm:$0xff] }
 0x15a   :  { %1182 = vmatpush2.msra.mxu1 %v462_v11  ;;  %1259 = vmatpush2.msra.mxu0 %v590_v13  ;;  %v1310_v61 = vld [vmem:[#allocation8 + $0xc8] sm:$0xff]  ;;  %v1297_v11 = vld [vmem:[#allocation8 + $0x60] sm:$0xff] }
 0x15b   :  { %1183 = vmatprep.subr.mxu1 %v459_v14  ;;  %1117 = vmatmul.mubr.f32.gmra.mxu0 %v2224_v23  ;;  %v1442_v0 = vld [vmem:[#allocation8 + $0x4e8] sm:$0xff]  ;;  %v1429_v14 = vld [vmem:[#allocation8 + $0x480] sm:$0xff] }
 0x15c   :  { %1260 = vmatprep.subr.mxu0 %v587_v15  ;;  %1184 = vmatpush2.msra.mxu1 %v458_v17  ;;  %v1306_v1 = vld [vmem:[#allocation8 + $0xa8] sm:$0xff]  ;;  %v1293_v15 = vld [vmem:[#allocation8 + $0x40] sm:$0xff] }
 0x15d   :  { %1261 = vmatpush2.msra.mxu0 %v586_v19  ;;  %1185 = vmatprep.subr.mxu1 %v455_v20  ;;  %v1438_v4 = vld [vmem:[#allocation8 + $0x4c8] sm:$0xff]  ;;  %v1425_v19 = vld [vmem:[#allocation8 + $0x460] sm:$0xff] }
 0x15e   :  { %1262 = vmatprep.subr.mxu0 %v583_v21  ;;  %1186 = vmatpush2.msra.mxu1 %v454_v25  ;;  %v1302_v5 = vld [vmem:[#allocation8 + $0x88] sm:$0xff]  ;;  %v1289_v20 = vld [vmem:[#allocation8 + $0x20] sm:$0xff] }
 0x15f   :  { %1187 = vmatprep.mubr.f32.mxu1 %v2225_v28  ;;  %1263 = vmatpush2.msra.mxu0 %v582_v26  ;;  %v1434_v8 = vld [vmem:[#allocation8 + $0x4a8] sm:$0xff]  ;;  %v1421_v25 = vld [vmem:[#allocation8 + $0x440] sm:$0xff] }
 0x160   :  { %2124 = vmatprep.mubr.msk.f32.mxu0 %vm654_vm0, %v2226_v29  ;;  %1188 = vmatmul.mubr.f32.vlgmr.msra.gmra.mxu1 %v2227_v31  ;;  %v1298_v9 = vld [vmem:[#allocation8 + $0x68] sm:$0xff]  ;;  %v1285_v26 = vld [vmem:[#allocation8] sm:$0xff] }
 0x161   :  { %1265 = vmatmul.mubr.f32.vlgmr.msra.gmra.mxu0 %v2228_v32  ;;  %1193 = vmatprep.mubr.f32.mxu1 %v2478_v18  ;;  %v1470_v18 = vld [vmem:[#allocation8 + $0x5c8] sm:$0xff]  ;;  %v1409_v31 = vld [vmem:[#allocation8 + $0x3e0] sm:$0xff] }
 0x162   :  { %2125 = vmatprep.mubr.msk.f32.mxu0 %vm654_vm0, %v2483_v24  ;;  %1563 = vmatprep.subr.mxu0 %v1346_v30  ;;  %v1469_v24 = vld [vmem:[#allocation8 + $0x5c0] sm:$0xff]  ;;  %v1430_v12 = vld [vmem:[#allocation8 + $0x488] sm:$0xff] }
 0x163   :  { %1564 = vmatpush1.msra.mxu0 %v1345_v33  ;;  %1640 = vmatprep.subr.mxu1 %v1474_v38  ;;  %v1294_v13 = vld [vmem:[#allocation8 + $0x48] sm:$0xff]  ;;  %v1417_v30 = vld [vmem:[#allocation8 + $0x420] sm:$0xff] }
 0x164   :  { %1194 = vmatmul.mubr.f32.gmra.mxu1 %v2480_v22  ;;  %1565 = vmatprep.subr.mxu0 %v1342_v34  ;;  %v1465_v22 = vld [vmem:[#allocation8 + $0x5a0] sm:$0xff]  ;;  %v1426_v16 = vld [vmem:[#allocation8 + $0x468] sm:$0xff] }
 0x165   :  { %1271 = vmatmul.mubr.f32.gmra.mxu0 %v2485_v27  ;;  %1641 = vmatpush1.msra.mxu1 %v1473_v40  ;;  %v1329_v27 = vld [vmem:[#allocation8 + $0x160] sm:$0xff]  ;;  %v1290_v17 = vld [vmem:[#allocation8 + $0x28] sm:$0xff] }
 0x166   :  { %1566 = vmatpush1.msra.mxu0 %v1341_v35  ;;  %1642 = vmatprep.subr.mxu1 %v1470_v18  ;;  %v1422_v21 = vld [vmem:[#allocation8 + $0x448] sm:$0xff]  ;;  %v1413_v34 = vld [vmem:[#allocation8 + $0x400] sm:$0xff] }
 0x167   :  { %1567 = vmatprep.subr.mxu0 %v1338_v36  ;;  %1643 = vmatpush1.msra.mxu1 %v1469_v24  ;;  %v1286_v23 = vld [vmem:[#allocation8 + $0x8] sm:$0xff]  ;;  %v1405_v35 = vld [vmem:[#allocation8 + $0x3c0] sm:$0xff] }
 0x168   :  { %1568 = vmatpush1.msra.mxu0 %v1337_v37  ;;  %1644 = vmatprep.subr.mxu1 %v1466_v43  ;;  %v1418_v28 = vld [vmem:[#allocation8 + $0x428] sm:$0xff]  ;;  %v1537_v38 = vld [vmem:[#allocation8 + $0x7e0] sm:$0xff] }
 0x169   :  { %1569 = vmatprep.subr.mxu0 %v1334_v39  ;;  %1645 = vmatpush1.msra.mxu1 %v1465_v22  ;;  %v1410_v29 = vld [vmem:[#allocation8 + $0x3e8] sm:$0xff]  ;;  %v1401_v39 = vld [vmem:[#allocation8 + $0x3a0] sm:$0xff] }
 0x16a   :  { %1570 = vmatpush1.msra.mxu0 %v1333_v41  ;;  %1646 = vmatprep.subr.mxu1 %v1462_v44  ;;  %v1414_v32 = vld [vmem:[#allocation8 + $0x408] sm:$0xff]  ;;  %v1533_v41 = vld [vmem:[#allocation8 + $0x7c0] sm:$0xff] }
 0x16b   :  { %1571 = vmatprep.subr.mxu0 %v1330_v42  ;;  %1647 = vmatpush1.msra.mxu1 %v1461_v46  ;;  %v1406_v33 = vld [vmem:[#allocation8 + $0x3c8] sm:$0xff]  ;;  %v1397_v24 = vld [vmem:[#allocation8 + $0x380] sm:$0xff] }
 0x16c   :  { %1572 = vmatpush1.msra.mxu0 %v1329_v27  ;;  %1648 = vmatprep.subr.mxu1 %v1458_v48  ;;  %v1538_v36 = vld [vmem:[#allocation8 + $0x7e8] sm:$0xff]  ;;  %v1529_v22 = vld [vmem:[#allocation8 + $0x7a0] sm:$0xff]  ;;  %v634_v27 = vlaneseq }
 0x16d   :  { %1573 = vmatprep.subr.mxu0 %v1326_v45  ;;  %1649 = vmatpush1.msra.mxu1 %v1457_v50  ;;  %v1402_v37 = vld [vmem:[#allocation8 + $0x3a8] sm:$0xff]  ;;  %v1393_v44 = vld [vmem:[#allocation8 + $0x360] sm:$0xff] }
 0x16e   :  { %1574 = vmatpush1.msra.mxu0 %v1325_v47  ;;  %1650 = vmatprep.subr.mxu1 %v1454_v52  ;;  %v1534_v40 = vld [vmem:[#allocation8 + $0x7c8] sm:$0xff]  ;;  %v1525_v47 = vld [vmem:[#allocation8 + $0x780] sm:$0xff]  ;;  %v2497_v52 = vshrl.u32 %v634_v27, 7 }
 0x16f   :  { %1575 = vmatprep.subr.mxu0 %v1322_v49  ;;  %1651 = vmatpush1.msra.mxu1 %v1453_v54  ;;  %v1398_v18 = vld [vmem:[#allocation8 + $0x388] sm:$0xff]  ;;  %v1389_v48 = vld [vmem:[#allocation8 + $0x340] sm:$0xff] }
 0x170   :  { %1576 = vmatpush1.msra.mxu0 %v1321_v51  ;;  %1652 = vmatprep.subr.mxu1 %v1450_v56  ;;  %v1530_v42 = vld [vmem:[#allocation8 + $0x7a8] sm:$0xff]  ;;  %v1521_v51 = vld [vmem:[#allocation8 + $0x760] sm:$0xff] }
 0x171   :  { %1577 = vmatprep.subr.mxu0 %v1318_v53  ;;  %1653 = vmatpush1.msra.mxu1 %v1449_v58  ;;  %v1394_v43 = vld [vmem:[#allocation8 + $0x368] sm:$0xff]  ;;  %v1385_v53 = vld [vmem:[#allocation8 + $0x320] sm:$0xff] }
 0x172   :  { %1578 = vmatpush1.msra.mxu0 %v1317_v55  ;;  %1654 = vmatprep.subr.mxu1 %v1446_v60  ;;  %v1526_v45 = vld [vmem:[#allocation8 + $0x788] sm:$0xff]  ;;  %v1517_v56 = vld [vmem:[#allocation8 + $0x740] sm:$0xff] }
 0x173   :  { %1579 = vmatprep.subr.mxu0 %v1314_v57  ;;  %1655 = vmatpush1.msra.mxu1 %v1445_v62  ;;  %v1390_v46 = vld [vmem:[#allocation8 + $0x348] sm:$0xff]  ;;  %v1381_v57 = vld [vmem:[#allocation8 + $0x300] sm:$0xff]  ;;  %v636_v62 = vsub.s32 0, %v2497_v52 }
 0x174   :  { %1580 = vmatpush1.msra.mxu0 %v1313_v59  ;;  %1656 = vmatprep.subr.mxu1 %v1442_v0  ;;  %v1522_v49 = vld [vmem:[#allocation8 + $0x768] sm:$0xff]  ;;  %v804_v59 = vpop.f32.mrf.mxu1 }
 0x175   :  { %1581 = vmatprep.subr.mxu0 %v1310_v61  ;;  %1657 = vmatpush1.msra.mxu1 %v1441_v2  ;;  %v1386_v50 = vld [vmem:[#allocation8 + $0x328] sm:$0xff]  ;;  %v1513_v61 = vld [vmem:[#allocation8 + $0x720] sm:$0xff]  ;;  %v727_v2 = vpop.f32.mrf.mxu0 }
 0x176   :  { %1582 = vmatpush1.msra.mxu0 %v1309_v63  ;;  %1658 = vmatprep.subr.mxu1 %v1438_v4  ;;  %v1518_v54 = vld [vmem:[#allocation8 + $0x748] sm:$0xff]  ;;  %v1377_v63 = vld [vmem:[#allocation8 + $0x2e0] sm:$0xff] }
 0x177   :  { %1583 = vmatprep.subr.mxu0 %v1306_v1  ;;  %1659 = vmatpush1.msra.mxu1 %v1437_v6  ;;  %v1382_v55 = vld [vmem:[#allocation8 + $0x308] sm:$0xff]  ;;  %v2500_v1 = vld [vmem:[#allocation7] sm:$0xf]  ;;  %v1509_v4 = vld [vmem:[#allocation8 + $0x700] sm:$0xff] }
 0x178   :  { %1584 = vmatpush1.msra.mxu0 %v1305_v3  ;;  %1660 = vmatprep.subr.mxu1 %v1434_v8  ;;  %v1514_v58 = vld [vmem:[#allocation8 + $0x728] sm:$0xff]  ;;  %v1373_v6 = vld [vmem:[#allocation8 + $0x2c0] sm:$0xff]  ;;  %v806_v8 = vpop.f32.mrf.mxu1 }
 0x179   :  { %1585 = vmatprep.subr.mxu0 %v1302_v5  ;;  %1661 = vmatpush1.msra.mxu1 %v1433_v10  ;;  %v1378_v60 = vld [vmem:[#allocation8 + $0x2e8] sm:$0xff]  ;;  %v640_v5 = vsub.s32 1, %v2497_v52  ;;  %v637_v10 = vrot.slane %v2500_v1, %v636_v62 }
 0x17a   :  { %1586 = vmatpush1.msra.mxu0 %v1301_v7  ;;  %1662 = vmatprep.subr.mxu1 %v1430_v12  ;;  %v1510_v0 = vld [vmem:[#allocation8 + $0x708] sm:$0xff]  ;;  %v729_v12 = vpop.f32.mrf.mxu0 }
 0x17b   :  { %1587 = vmatprep.subr.mxu0 %v1298_v9  ;;  %1663 = vmatpush1.msra.mxu1 %v1429_v14  ;;  %v1374_v3 = vld [vmem:[#allocation8 + $0x2c8] sm:$0xff] }
 0x17c   :  { %1588 = vmatpush1.msra.mxu0 %v1297_v11  ;;  %1664 = vmatprep.subr.mxu1 %v1426_v16  ;;  %v1506_v7 = vld [vmem:[#allocation8 + $0x6e8] sm:$0xff]  ;;  %v1369_v11 = vld [vmem:[#allocation8 + $0x2a0] sm:$0xff] }
 0x17d   :  { %1589 = vmatprep.subr.mxu0 %v1294_v13  ;;  %1665 = vmatpush1.msra.mxu1 %v1425_v19  ;;  %v1370_v9 = vld [vmem:[#allocation8 + $0x2a8] sm:$0xff]  ;;  %v1365_v16 = vld [vmem:[#allocation8 + $0x280] sm:$0xff] }
 0x17e   :  { %1590 = vmatpush1.msra.mxu0 %v1293_v15  ;;  %1666 = vmatprep.subr.mxu1 %v1422_v21  ;;  %v1366_v14 = vld [vmem:[#allocation8 + $0x288] sm:$0xff]  ;;  %v641_v15 = vrot.slane %v2500_v1, %v640_v5 }
 0x17f   :  { %1591 = vmatprep.subr.mxu0 %v1290_v17  ;;  %1667 = vmatpush1.msra.mxu1 %v1421_v25  ;;  %v1362_v19 = vld [vmem:[#allocation8 + $0x268] sm:$0xff]  ;;  %v1361_v25 = vld [vmem:[#allocation8 + $0x260] sm:$0xff] }
 0x180   :  { %1592 = vmatpush1.msra.mxu0 %v1289_v20  ;;  %1668 = vmatprep.subr.mxu1 %v1418_v28  ;;  %v1505_v20 = vld [vmem:[#allocation8 + $0x6e0] sm:$0xff]  ;;  %v1502_v21 = vld [vmem:[#allocation8 + $0x6c8] sm:$0xff] }
 0x181   :  { %1593 = vmatprep.subr.mxu0 %v1286_v23  ;;  %1669 = vmatpush1.msra.mxu1 %v1417_v30  ;;  %v728_v23 = vadd.f32 %v727_v2, %v637_v10  ;;  %v1358_v28 = vld [vmem:[#allocation8 + $0x248] sm:$0xff]  ;;  %v1357_v30 = vld [vmem:[#allocation8 + $0x240] sm:$0xff] }
 0x182   :  { %1594 = vmatpush1.msra.mxu0 %v1285_v26  ;;  %1670 = vmatprep.subr.mxu1 %v1414_v32 }
 0x183   :  { %1595 = vmatprep.subr.mxu0 %v1410_v29  ;;  %1671 = vmatpush1.msra.mxu1 %v1413_v34  ;;  %v730_v29 = vadd.f32 %v729_v12, %v641_v15  ;;  %v1498_v34 = vld [vmem:[#allocation8 + $0x6a8] sm:$0xff]  ;;  %v1476_v12 = vld [vmem:[#allocation8 + $0x5f8] sm:$0xff] }
 0x184   :  { %1596 = vmatpush2.msra.mxu0 %v1409_v31  ;;  %1672 = vmatprep.subr.mxu1 %v1538_v36  ;;  %v1501_v31 = vld [vmem:[#allocation8 + $0x6c0] sm:$0xff] }
 0x185   :  { %1597 = vmatprep.subr.mxu0 %v1406_v33  ;;  %1673 = vmatpush2.msra.mxu1 %v1537_v38  ;;  %v1354_v33 = vld [vmem:[#allocation8 + $0x228] sm:$0xff]  ;;  %v1353_v36 = vld [vmem:[#allocation8 + $0x220] sm:$0xff] }
 0x186   :  { %1598 = vmatpush2.msra.mxu0 %v1405_v35  ;;  %1674 = vmatprep.subr.mxu1 %v1534_v40  ;;  %v805_v35 = vadd.f32 %v804_v59, %v728_v23  ;;  %v1350_v40 = vld [vmem:[#allocation8 + $0x208] sm:$0xff]  ;;  %v1331_v23 = vld [vmem:[#allocation8 + $0x170] sm:$0xff] }
 0x187   :  { %1599 = vmatprep.subr.mxu0 %v1402_v37  ;;  %1675 = vmatpush2.msra.mxu1 %v1533_v41  ;;  %v1497_v37 = vld [vmem:[#allocation8 + $0x6a0] sm:$0xff]  ;;  %v807_v41 = vadd.f32 %v806_v8, %v730_v29  ;;  %v1323_v29 = vld [vmem:[#allocation8 + $0x130] sm:$0xff] }
 0x188   :  { %1600 = vmatpush2.msra.mxu0 %v1401_v39  ;;  %1676 = vmatprep.subr.mxu1 %v1530_v42  ;;  %v1477_v8 = vld [vmem:[#allocation8 + $0x600] sm:$0xff] }
 0x189   :  { %1601 = vmatprep.subr.mxu0 %v1398_v18  ;;  %1677 = vmatpush2.msra.mxu1 %v1529_v22  ;;  %v1494_v18 = vld [vmem:[#allocation8 + $0x688] sm:$0xff]  ;;  %v1493_v22 = vld [vmem:[#allocation8 + $0x680] sm:$0xff] }
 0x18a   :  { %1602 = vmatpush2.msra.mxu0 %v1397_v24  ;;  %1678 = vmatprep.subr.mxu1 %v1526_v45  ;;  %v1490_v45 = vld [vmem:[#allocation8 + $0x668] sm:$0xff] }
 0x18b   :  { %1603 = vmatprep.subr.mxu0 %v1394_v43  ;;  %1679 = vmatpush2.msra.mxu1 %v1525_v47  ;;  %v1349_v43 = vld [vmem:[#allocation8 + $0x200] sm:$0xff] }
 0x18c   :  { %1604 = vmatpush2.msra.mxu0 %v1393_v44  ;;  %1680 = vmatprep.subr.mxu1 %v1522_v49  ;;  %v1348_v44 = vld [vmem:[#allocation8 + $0x1f8] sm:$0xff] }
 0x18d   :  { %1605 = vmatprep.subr.mxu0 %v1390_v46  ;;  %1681 = vmatpush2.msra.mxu1 %v1521_v51  ;;  %v1486_v51 = vld [vmem:[#allocation8 + $0x648] sm:$0xff] }
 0x18e   :  { %1606 = vmatpush2.msra.mxu0 %v1389_v48  ;;  %1682 = vmatprep.subr.mxu1 %v1518_v54  ;;  %v1489_v48 = vld [vmem:[#allocation8 + $0x660] sm:$0xff] }
 0x18f   :  { %1607 = vmatprep.subr.mxu0 %v1386_v50  ;;  %1683 = vmatpush2.msra.mxu1 %v1517_v56  ;;  %v733_v17 = vpop.f32.mrf.mxu0 }
 0x190   :  { %1608 = vmatpush2.msra.mxu0 %v1385_v53  ;;  %1684 = vmatprep.subr.mxu1 %v1514_v58  ;;  %v734_v24 = vadd.f32 %v733_v17, %v637_v10  ;;  %v1336_v17 = vld [vmem:[#allocation8 + $0x198] sm:$0xff] }
 0x191   :  { %1609 = vmatprep.subr.mxu0 %v1382_v55  ;;  %1685 = vmatpush2.msra.mxu1 %v1513_v61  ;;  %v735_v32 = vpop.f32.mrf.mxu0  ;;  %v1485_v55 = vld [vmem:[#allocation8 + $0x640] sm:$0xff] }
 0x192   :  { %1610 = vmatpush2.msra.mxu0 %v1381_v57  ;;  %1686 = vmatprep.subr.mxu1 %v1510_v0  ;;  %v810_v13 = vpop.f32.mrf.mxu1  ;;  %v736_v46 = vadd.f32 %v735_v32, %v641_v15  ;;  %v1482_v57 = vld [vmem:[#allocation8 + $0x628] sm:$0xff]  ;;  %v1481_v61 = vld [vmem:[#allocation8 + $0x620] sm:$0xff]  ;;  %v1339_v15 = vld [vmem:[#allocation8 + $0x1b0] sm:$0xff] }
 0x193   :  { %1611 = vmatprep.subr.mxu0 %v1378_v60  ;;  %1687 = vmatpush2.msra.mxu1 %v1509_v4  ;;  %v811_v53 = vadd.f32 %v810_v13, %v734_v24  ;;  %v1478_v4 = vld [vmem:[#allocation8 + $0x608] sm:$0xff]  ;;  %v1316_v32 = vld [vmem:[#allocation8 + $0xf8] sm:$0xff]  ;;  %v1295_v24 = vld [vmem:[#allocation8 + $0x50] sm:$0xff] }
 0x194   :  { %1612 = vmatpush2.msra.mxu0 %v1377_v63  ;;  %1688 = vmatprep.subr.mxu1 %v1506_v7  ;;  %v812_v26 = vpop.f32.mrf.mxu1  ;;  %v1344_v7 = vld [vmem:[#allocation8 + $0x1d8] sm:$0xff] }
 0x195   :  { %1613 = vmatprep.subr.mxu0 %v1374_v3  ;;  %1689 = vmatpush2.msra.mxu1 %v1505_v20  ;;  %v813_v58 = vadd.f32 %v812_v26, %v736_v46  ;;  %v1347_v3 = vld [vmem:[#allocation8 + $0x1f0] sm:$0xff]  ;;  %v1408_v46 = vld [vmem:[#allocation8 + $0x3d8] sm:$0xff] }
 0x196   :  { %1614 = vmatpush2.msra.mxu0 %v1373_v6  ;;  %1690 = vmatprep.subr.mxu1 %v1502_v21  ;;  %v1335_v20 = vld [vmem:[#allocation8 + $0x190] sm:$0xff]  ;;  %v1332_v21 = vld [vmem:[#allocation8 + $0x178] sm:$0xff] }
 0x197   :  { %1615 = vmatprep.subr.mxu0 %v1370_v9  ;;  %1691 = vmatpush2.msra.mxu1 %v1501_v31  ;;  %v1327_v26 = vld [vmem:[#allocation8 + $0x150] sm:$0xff] }
 0x198   :  { %1616 = vmatpush2.msra.mxu0 %v1369_v11  ;;  %1692 = vmatprep.subr.mxu1 %v1498_v34  ;;  %v958_v38 = vpop.f32.mrf.mxu1  ;;  %v1343_v11 = vld [vmem:[#allocation8 + $0x1d0] sm:$0xff]  ;;  %v1312_v34 = vld [vmem:[#allocation8 + $0xd8] sm:$0xff] }
 0x199   :  { %1617 = vmatprep.subr.mxu0 %v1366_v14  ;;  %1693 = vmatpush2.msra.mxu1 %v1497_v37  ;;  %v1340_v14 = vld [vmem:[#allocation8 + $0x1b8] sm:$0xff]  ;;  %v1319_v31 = vld [vmem:[#allocation8 + $0x110] sm:$0xff] }
 0x19a   :  { %1618 = vmatpush2.msra.mxu0 %v1365_v16  ;;  %1694 = vmatprep.subr.mxu1 %v1494_v18  ;;  %v960_v49 = vpop.f32.mrf.mxu1  ;;  %v1307_v37 = vld [vmem:[#allocation8 + $0xb0] sm:$0xff] }
 0x19b   :  { %1619 = vmatprep.subr.mxu0 %v1362_v19  ;;  %1695 = vmatpush2.msra.mxu1 %v1493_v22  ;;  %v1299_v18 = vld [vmem:[#allocation8 + $0x70] sm:$0xff]  ;;  %v1288_v22 = vld [vmem:[#allocation8 + $0x18] sm:$0xff] }
 0x19c   :  { %1620 = vmatpush2.msra.mxu0 %v1361_v25  ;;  %1696 = vmatprep.subr.mxu1 %v1490_v45  ;;  %v1328_v25 = vld [vmem:[#allocation8 + $0x158] sm:$0xff]  ;;  %v1411_v45 = vld [vmem:[#allocation8 + $0x3f0] sm:$0xff] }
 0x19d   :  { %1621 = vmatprep.subr.mxu0 %v1358_v28  ;;  %1697 = vmatpush2.msra.mxu1 %v1489_v48  ;;  %v1324_v28 = vld [vmem:[#allocation8 + $0x138] sm:$0xff] }
 0x19e   :  { %1622 = vmatpush2.msra.mxu0 %v1357_v30  ;;  %1698 = vmatprep.subr.mxu1 %v1486_v51  ;;  %v1320_v30 = vld [vmem:[#allocation8 + $0x118] sm:$0xff] }
 0x19f   :  { %v881_v39 = vpop.f32.mrf.mxu0  ;;  %1623 = vmatprep.subr.mxu0 %v1354_v33  ;;  %1699 = vmatpush2.msra.mxu1 %v1485_v55  ;;  %v1315_v33 = vld [vmem:[#allocation8 + $0xf0] sm:$0xff]  ;;  %v1404_v48 = vld [vmem:[#allocation8 + $0x3b8] sm:$0xff] }
 0x1a0   :  { %v882_v42 = vadd.f32 %v881_v39, %v805_v35  ;;  %1624 = vmatpush2.msra.mxu0 %v1353_v36  ;;  %1700 = vmatprep.subr.mxu1 %v1482_v57  ;;  %v1311_v35 = vld [vmem:[#allocation8 + $0xd0] sm:$0xff]  ;;  %v1308_v36 = vld [vmem:[#allocation8 + $0xb8] sm:$0xff] }
 0x1a1   :  { %v883_v27 = vpop.f32.mrf.mxu0  ;;  %1625 = vmatprep.subr.mxu0 %v1350_v40  ;;  %1701 = vmatpush2.msra.mxu1 %v1481_v61  ;;  %v1303_v39 = vld [vmem:[#allocation8 + $0x90] sm:$0xff]  ;;  %v1300_v40 = vld [vmem:[#allocation8 + $0x78] sm:$0xff] }
 0x1a2   :  { %v884_v47 = vadd.f32 %v883_v27, %v807_v41  ;;  %v2509_v50 = vadd.f32 %v958_v38, %v882_v42  ;;  %1626 = vmatpush2.msra.mxu0 %v1349_v43  ;;  %1702 = vmatprep.subr.mxu1 %v1478_v4  ;;  %v1304_v38 = vld [vmem:[#allocation8 + $0x98] sm:$0xff]  ;;  %v1291_v43 = vld [vmem:[#allocation8 + $0x30] sm:$0xff] }
 0x1a3   :  { %1717 = vmatprep.subr.mxu0 %v1348_v44  ;;  %1703 = vmatpush2.msra.mxu1 %v1477_v8  ;;  %v1296_v41 = vld [vmem:[#allocation8 + $0x58] sm:$0xff]  ;;  %v1287_v27 = vld [vmem:[#allocation8 + $0x10] sm:$0xff] }
 0x1a4   :  { %v961_v54 = vadd.f32 %v960_v49, %v884_v47  ;;  %v887_v56 = vpop.f32.mrf.mxu0  ;;  %v1277_v63 = vmax.f32 %v2509_v50, 0.0  ;;  %1794 = vmatprep.subr.mxu1 %v1476_v12  ;;  %v1292_v42 = vld [vmem:[#allocation8 + $0x38] sm:$0xff]  ;;  %v1407_v47 = vld [vmem:[#allocation8 + $0x3d0] sm:$0xff] }
 0x1a5   :  { %v888_v60 = vadd.f32 %v887_v56, %v811_v53  ;;  %v1412_v44 = vld [vmem:[#allocation8 + $0x3f8] sm:$0xff]  ;;  %v1403_v49 = vld [vmem:[#allocation8 + $0x3b0] sm:$0xff] }
 0x1a6   :  { %v1278_v59 = vmax.f32 %v961_v54, 0.0  ;;  %v889_v0 = vpop.f32.mrf.mxu0  ;;  %v1400_v51 = vld [vmem:[#allocation8 + $0x398] sm:$0xff]  ;;  %v1399_v53 = vld [vmem:[#allocation8 + $0x390] sm:$0xff] }
 0x1a7   :  { %v964_v2 = vpop.f32.mrf.mxu1  ;;  %v890_v6 = vadd.f32 %v889_v0, %v813_v58  ;;  %v1396_v54 = vld [vmem:[#allocation8 + $0x378] sm:$0xff]  ;;  %v1395_v55 = vld [vmem:[#allocation8 + $0x370] sm:$0xff] }
 0x1a8   :  { %1627 = vmatprep.mubr.f32.mxu0 %v1278_v59  ;;  %v2512_v9 = vadd.f32 %v964_v2, %v888_v60  ;;  %v1392_v56 = vld [vmem:[#allocation8 + $0x358] sm:$0xff]  ;;  %v1391_v57 = vld [vmem:[#allocation8 + $0x350] sm:$0xff] }
 0x1a9   :  { %v966_v10 = vpop.f32.mrf.mxu1  ;;  %1628 = vmatmul.mubr.f32.vlgmr.msra.gmra.mxu0 %v1277_v63  ;;  %v1388_v58 = vld [vmem:[#allocation8 + $0x338] sm:$0xff]  ;;  %v1383_v61 = vld [vmem:[#allocation8 + $0x310] sm:$0xff] }
 0x1aa   :  { %v2516_v13 = vadd.f32 %v966_v10, %v890_v6  ;;  %1718 = vmatpush1.msra.mxu0 %v1347_v3  ;;  %v1281_v19 = vmax.f32 %v2512_v9, 0.0  ;;  %v1384_v60 = vld [vmem:[#allocation8 + $0x318] sm:$0xff]  ;;  %v1379_v2 = vld [vmem:[#allocation8 + $0x2f0] sm:$0xff] }
 0x1ab   :  { %1719 = vmatprep.subr.mxu0 %v1344_v7  ;;  %v1380_v0 = vld [vmem:[#allocation8 + $0x2f8] sm:$0xff]  ;;  %v1375_v4 = vld [vmem:[#allocation8 + $0x2d0] sm:$0xff] }
 0x1ac   :  { %v1282_v16 = vmax.f32 %v2516_v13, 0.0  ;;  %1720 = vmatpush1.msra.mxu0 %v1343_v11  ;;  %v1376_v3 = vld [vmem:[#allocation8 + $0x2d8] sm:$0xff]  ;;  %v1371_v7 = vld [vmem:[#allocation8 + $0x2b0] sm:$0xff] }
 0x1ad   :  { %1721 = vmatprep.subr.mxu0 %v1340_v14  ;;  %v1372_v6 = vld [vmem:[#allocation8 + $0x2b8] sm:$0xff]  ;;  %v1367_v10 = vld [vmem:[#allocation8 + $0x290] sm:$0xff] }
 0x1ae   :  { %1633 = vmatprep.mubr.f32.mxu0 %v1282_v16  ;;  %1722 = vmatpush1.msra.mxu0 %v1339_v15  ;;  %v1368_v8 = vld [vmem:[#allocation8 + $0x298] sm:$0xff]  ;;  %v1363_v12 = vld [vmem:[#allocation8 + $0x270] sm:$0xff] }
 0x1af   :  { %1634 = vmatmul.mubr.f32.gmra.mxu0 %v1281_v19  ;;  %1723 = vmatprep.subr.mxu0 %v1336_v17  ;;  %v1364_v11 = vld [vmem:[#allocation8 + $0x278] sm:$0xff]  ;;  %v1359_v15 = vld [vmem:[#allocation8 + $0x250] sm:$0xff] }
 0x1b0   :  { %1781 = vmatprep.mubr.f32.mxu0 %v1278_v59  ;;  %1724 = vmatpush1.msra.mxu0 %v1335_v20  ;;  %v1387_v59 = vld [vmem:[#allocation8 + $0x330] sm:$0xff]  ;;  %v1360_v14 = vld [vmem:[#allocation8 + $0x258] sm:$0xff] }
 0x1b1   :  { %1725 = vmatprep.subr.mxu0 %v1332_v21  ;;  %v1356_v17 = vld [vmem:[#allocation8 + $0x238] sm:$0xff]  ;;  %v1355_v20 = vld [vmem:[#allocation8 + $0x230] sm:$0xff] }
 0x1b2   :  { %1726 = vmatpush1.msra.mxu0 %v1331_v23  ;;  %v1352_v21 = vld [vmem:[#allocation8 + $0x218] sm:$0xff]  ;;  %v1351_v23 = vld [vmem:[#allocation8 + $0x210] sm:$0xff] }
 0x1b3   :  { %1727 = vmatprep.subr.mxu0 %v1328_v25 }
 0x1b4   :  { %1728 = vmatpush1.msra.mxu0 %v1327_v26  ;;  %v644_v26 = vsub.s32 2, %v2497_v52 }
 0x1b5   :  { %1729 = vmatprep.subr.mxu0 %v1324_v28 }
 0x1b6   :  { %1730 = vmatpush1.msra.mxu0 %v1323_v29  ;;  %v648_v29 = vsub.s32 3, %v2497_v52 }
 0x1b7   :  { %1731 = vmatprep.subr.mxu0 %v1320_v30 }
 0x1b8   :  { %1732 = vmatpush1.msra.mxu0 %v1319_v31  ;;  %v645_v31 = vrot.slane %v2500_v1, %v644_v26 }
 0x1b9   :  { %1733 = vmatprep.subr.mxu0 %v1316_v32 }
 0x1ba   :  { %1734 = vmatpush1.msra.mxu0 %v1315_v33 }
 0x1bb   :  { %1735 = vmatprep.subr.mxu0 %v1312_v34 }
 0x1bc   :  { %1736 = vmatpush1.msra.mxu0 %v1311_v35 }
 0x1bd   :  { %1737 = vmatprep.subr.mxu0 %v1308_v36 }
 0x1be   :  { %1738 = vmatpush1.msra.mxu0 %v1307_v37 }
 0x1bf   :  { %1739 = vmatprep.subr.mxu0 %v1304_v38 }
 0x1c0   :  { %1740 = vmatpush1.msra.mxu0 %v1303_v39 }
 0x1c1   :  { %1741 = vmatprep.subr.mxu0 %v1300_v40 }
 0x1c2   :  { %1742 = vmatpush1.msra.mxu0 %v1299_v18 }
 0x1c3   :  { %1743 = vmatprep.subr.mxu0 %v1296_v41 }
 0x1c4   :  { %1744 = vmatpush1.msra.mxu0 %v1295_v24 }
 0x1c5   :  { %1745 = vmatprep.subr.mxu0 %v1292_v42 }
 0x1c6   :  { %1746 = vmatpush1.msra.mxu0 %v1291_v43 }
 0x1c7   :  { %1747 = vmatprep.subr.mxu0 %v1288_v22 }
 0x1c8   :  { %1748 = vmatpush1.msra.mxu0 %v1287_v27 }
 0x1c9   :  { %1749 = vmatprep.subr.mxu0 %v1412_v44 }
 0x1ca   :  { %1750 = vmatpush2.msra.mxu0 %v1411_v45 }
 0x1cb   :  { %1751 = vmatprep.subr.mxu0 %v1408_v46 }
 0x1cc   :  { %1752 = vmatpush2.msra.mxu0 %v1407_v47 }
 0x1cd   :  { %1753 = vmatprep.subr.mxu0 %v1404_v48 }
 0x1ce   :  { %1754 = vmatpush2.msra.mxu0 %v1403_v49 }
 0x1cf   :  { %1755 = vmatprep.subr.mxu0 %v1400_v51 }
 0x1d0   :  { %1756 = vmatpush2.msra.mxu0 %v1399_v53 }
 0x1d1   :  { %1757 = vmatprep.subr.mxu0 %v1396_v54  ;;  %v1475_v54 = vld [vmem:[#allocation8 + $0x5f0] sm:$0xff] }
 0x1d2   :  { %1758 = vmatpush2.msra.mxu0 %v1395_v55 }
 0x1d3   :  { %1759 = vmatprep.subr.mxu0 %v1392_v56  ;;  %v1472_v56 = vld [vmem:[#allocation8 + $0x5d8] sm:$0xff] }
 0x1d4   :  { %1760 = vmatpush2.msra.mxu0 %v1391_v57  ;;  %v1471_v57 = vld [vmem:[#allocation8 + $0x5d0] sm:$0xff] }
 0x1d5   :  { %1761 = vmatprep.subr.mxu0 %v1388_v58 }
 0x1d6   :  { %1762 = vmatpush2.msra.mxu0 %v1387_v59  ;;  %v1468_v59 = vld [vmem:[#allocation8 + $0x5b8] sm:$0xff] }
 0x1d7   :  { %1763 = vmatprep.subr.mxu0 %v1384_v60 }
 0x1d8   :  { %1764 = vmatpush2.msra.mxu0 %v1383_v61  ;;  %v1467_v61 = vld [vmem:[#allocation8 + $0x5b0] sm:$0xff] }
 0x1d9   :  { %1765 = vmatprep.subr.mxu0 %v1380_v0  ;;  %v1464_v0 = vld [vmem:[#allocation8 + $0x598] sm:$0xff] }
 0x1da   :  { %1766 = vmatpush2.msra.mxu0 %v1379_v2  ;;  %v1463_v2 = vld [vmem:[#allocation8 + $0x590] sm:$0xff] }
 0x1db   :  { %1767 = vmatprep.subr.mxu0 %v1376_v3  ;;  %v1460_v3 = vld [vmem:[#allocation8 + $0x578] sm:$0xff] }
 0x1dc   :  { %1768 = vmatpush2.msra.mxu0 %v1375_v4  ;;  %v1035_v25 = vpop.f32.mrf.mxu1  ;;  %v1910_v4 = vld [vmem:[#allocation11 + $0xf8] sm:$0xff] }
 0x1dd   :  { %1769 = vmatprep.subr.mxu0 %v1372_v6  ;;  %v1036_v9 = vadd.f32 %v1035_v25, %v645_v31  ;;  %v1894_v6 = vld [vmem:[#allocation11 + $0x78] sm:$0xff] }
 0x1de   :  { %1770 = vmatpush2.msra.mxu0 %v1371_v7  ;;  %v1037_v30 = vpop.f32.mrf.mxu1  ;;  %v1909_v7 = vld [vmem:[#allocation11 + $0xf0] sm:$0xff] }
 0x1df   :  { %1771 = vmatprep.subr.mxu0 %v1368_v8  ;;  %v1459_v8 = vld [vmem:[#allocation8 + $0x570] sm:$0xff]  ;;  %v1448_v25 = vld [vmem:[#allocation8 + $0x518] sm:$0xff] }
 0x1e0   :  { %1772 = vmatpush2.msra.mxu0 %v1367_v10  ;;  %v1893_v10 = vld [vmem:[#allocation11 + $0x70] sm:$0xff] }
 0x1e1   :  { %1773 = vmatprep.subr.mxu0 %v1364_v11  ;;  %v1456_v11 = vld [vmem:[#allocation8 + $0x558] sm:$0xff] }
 0x1e2   :  { %1774 = vmatpush2.msra.mxu0 %v1363_v12  ;;  %v1908_v12 = vld [vmem:[#allocation11 + $0xe8] sm:$0xff] }
 0x1e3   :  { %1775 = vmatprep.subr.mxu0 %v1360_v14  ;;  %v1112_v28 = vpop.f32.mrf.mxu0  ;;  %v1455_v14 = vld [vmem:[#allocation8 + $0x550] sm:$0xff] }
 0x1e4   :  { %1776 = vmatpush2.msra.mxu0 %v1359_v15  ;;  %v1113_v34 = vadd.f32 %v1112_v28, %v1036_v9  ;;  %v1892_v15 = vld [vmem:[#allocation11 + $0x68] sm:$0xff]  ;;  %v1906_v28 = vld [vmem:[#allocation11 + $0xd8] sm:$0xff] }
 0x1e5   :  { %1777 = vmatprep.subr.mxu0 %v1356_v17  ;;  %v1114_v32 = vpop.f32.mrf.mxu0  ;;  %v1452_v17 = vld [vmem:[#allocation8 + $0x538] sm:$0xff] }
 0x1e6   :  { %1778 = vmatpush2.msra.mxu0 %v1355_v20  ;;  %v1907_v20 = vld [vmem:[#allocation11 + $0xe0] sm:$0xff]  ;;  %v1440_v9 = vld [vmem:[#allocation8 + $0x4d8] sm:$0xff] }
 0x1e7   :  { %1779 = vmatprep.subr.mxu0 %v1352_v21  ;;  %v1451_v21 = vld [vmem:[#allocation8 + $0x530] sm:$0xff] }
 0x1e8   :  { %1780 = vmatpush2.msra.mxu0 %v1351_v23  ;;  %v1891_v23 = vld [vmem:[#allocation11 + $0x60] sm:$0xff] }
 0x1e9   :  { %1782 = vmatmul.mubr.f32.vlgmr.msra.gmra.mxu0 %v1277_v63  ;;  %v649_v63 = vrot.slane %v2500_v1, %v648_v29  ;;  %2127 = vmatprep.subr.mxu0 %v1910_v4  ;;  %v1528_v4 = vld [vmem:[#allocation8 + $0x798] sm:$0xff] }
 0x1ea   :  { %1787 = vmatprep.mubr.f32.mxu0 %v1282_v16  ;;  %2128 = vmatpush3.msra.mxu0 %v1894_v6  ;;  %v1527_v6 = vld [vmem:[#allocation8 + $0x790] sm:$0xff] }
 0x1eb   :  { %v1038_v33 = vadd.f32 %v1037_v30, %v649_v63  ;;  %2129 = vmatprep.subr.mxu0 %v1909_v7  ;;  %v1447_v30 = vld [vmem:[#allocation8 + $0x510] sm:$0xff]  ;;  %v1524_v7 = vld [vmem:[#allocation8 + $0x778] sm:$0xff] }
 0x1ec   :  { %2130 = vmatpush3.msra.mxu0 %v1893_v10  ;;  %v1520_v10 = vld [vmem:[#allocation8 + $0x758] sm:$0xff] }
 0x1ed   :  { %1788 = vmatmul.mubr.f32.gmra.mxu0 %v1281_v19  ;;  %v1115_v38 = vadd.f32 %v1114_v32, %v1038_v33  ;;  %2131 = vmatprep.subr.mxu0 %v1908_v12  ;;  %v1444_v32 = vld [vmem:[#allocation8 + $0x4f8] sm:$0xff]  ;;  %v1888_v33 = vld [vmem:[#allocation11 + $0x48] sm:$0xff] }
 0x1ee   :  { %2132 = vmatpush3.msra.mxu0 %v1892_v15  ;;  %v1516_v12 = vld [vmem:[#allocation8 + $0x738] sm:$0xff] }
 0x1ef   :  { %2133 = vmatprep.subr.mxu0 %v1907_v20  ;;  %v1512_v15 = vld [vmem:[#allocation8 + $0x718] sm:$0xff] }
 0x1f0   :  { %2134 = vmatpush3.msra.mxu0 %v1891_v23  ;;  %v1508_v20 = vld [vmem:[#allocation8 + $0x6f8] sm:$0xff] }
 0x1f1   :  { %2135 = vmatprep.subr.mxu0 %v1906_v28  ;;  %v1504_v23 = vld [vmem:[#allocation8 + $0x6d8] sm:$0xff] }
 0x1f2   :  { %v1500_v28 = vld [vmem:[#allocation8 + $0x6b8] sm:$0xff] }
 0x218   :  { %v1041_v50 = vpop.f32.mrf.mxu1 }
 0x219   :  { %v1042_v35 = vadd.f32 %v1041_v50, %v645_v31  ;;  %v1890_v31 = vld [vmem:[#allocation11 + $0x58] sm:$0xff]  ;;  %v1905_v50 = vld [vmem:[#allocation11 + $0xd0] sm:$0xff] }
 0x21a   :  { %v1043_v19 = vpop.f32.mrf.mxu1  ;;  %2136 = vmatpush3.msra.mxu0 %v1890_v31  ;;  %v1496_v31 = vld [vmem:[#allocation8 + $0x698] sm:$0xff] }
 0x21b   :  { %v1118_v13 = vpop.f32.mrf.mxu0  ;;  %v1044_v39 = vadd.f32 %v1043_v19, %v649_v63  ;;  %v1443_v63 = vld [vmem:[#allocation8 + $0x4f0] sm:$0xff]  ;;  %2137 = vmatprep.subr.mxu0 %v1905_v50  ;;  %v1492_v50 = vld [vmem:[#allocation8 + $0x678] sm:$0xff] }
 0x21c   :  { %v1119_v24 = vadd.f32 %v1118_v13, %v1042_v35  ;;  %v1889_v13 = vld [vmem:[#allocation11 + $0x50] sm:$0xff]  ;;  %v1903_v35 = vld [vmem:[#allocation11 + $0xc0] sm:$0xff] }
 0x21d   :  { %v1120_v16 = vpop.f32.mrf.mxu0  ;;  %v1439_v19 = vld [vmem:[#allocation8 + $0x4d0] sm:$0xff]  ;;  %2138 = vmatpush3.msra.mxu0 %v1889_v13  ;;  %v1488_v13 = vld [vmem:[#allocation8 + $0x658] sm:$0xff] }
 0x21e   :  { %v1121_v27 = vadd.f32 %v1120_v16, %v1044_v39  ;;  %v1904_v16 = vld [vmem:[#allocation11 + $0xc8] sm:$0xff]  ;;  %v1902_v39 = vld [vmem:[#allocation11 + $0xb8] sm:$0xff] }
 0x21f   :  { %2139 = vmatprep.subr.mxu0 %v1904_v16  ;;  %v1484_v16 = vld [vmem:[#allocation8 + $0x638] sm:$0xff] }
 0x220   :  { %v1189_v36 = vpop.f32.mrf.mxu1  ;;  %2140 = vmatpush3.msra.mxu0 %v1888_v33  ;;  %v1480_v33 = vld [vmem:[#allocation8 + $0x618] sm:$0xff] }
 0x221   :  { %v1266_v37 = vpop.f32.mrf.mxu0  ;;  %v1190_v40 = vadd.f32 %v1189_v36, %v1113_v34  ;;  %v1436_v34 = vld [vmem:[#allocation8 + $0x4b8] sm:$0xff]  ;;  %v1435_v36 = vld [vmem:[#allocation8 + $0x4b0] sm:$0xff]  ;;  %2141 = vmatprep.subr.mxu0 %v1903_v35 }
 0x222   :  { %v1191_v18 = vpop.f32.mrf.mxu1  ;;  %v1898_v35 = vld [vmem:[#allocation11 + $0x98] sm:$0xff] }
 0x223   :  { %v1268_v41 = vpop.f32.mrf.mxu0  ;;  %v1192_v42 = vadd.f32 %v1191_v18, %v1115_v38  ;;  %v2538_v43 = vadd.f32 %v1266_v37, %v1190_v40  ;;  %v1887_v37 = vld [vmem:[#allocation11 + $0x40] sm:$0xff]  ;;  %v1432_v38 = vld [vmem:[#allocation8 + $0x498] sm:$0xff]  ;;  %v1431_v40 = vld [vmem:[#allocation8 + $0x490] sm:$0xff] }
 0x224   :  { %v1195_v22 = vpop.f32.mrf.mxu1  ;;  %v1886_v18 = vld [vmem:[#allocation11 + $0x38] sm:$0xff]  ;;  %2142 = vmatpush3.msra.mxu0 %v1887_v37  ;;  %v1897_v37 = vld [vmem:[#allocation11 + $0x90] sm:$0xff] }
 0x225   :  { %v1272_v1 = vpop.f32.mrf.mxu0  ;;  %v1269_v44 = vadd.f32 %v1268_v41, %v1192_v42  ;;  %v1196_v45 = vadd.f32 %v1195_v22, %v1119_v24  ;;  %v1279_v51 = vmax.f32 %v2538_v43, 0.0  ;;  %v1428_v41 = vld [vmem:[#allocation8 + $0x478] sm:$0xff]  ;;  %v1427_v42 = vld [vmem:[#allocation8 + $0x470] sm:$0xff]  ;;  %2143 = vmatprep.subr.mxu0 %v1902_v39  ;;  %v1895_v43 = vld [vmem:[#allocation11 + $0x80] sm:$0xff] }
 0x226   :  { %v1197_v46 = vpop.f32.mrf.mxu1  ;;  %v1901_v24 = vld [vmem:[#allocation11 + $0xb0] sm:$0xff]  ;;  %2144 = vmatpush3.msra.mxu0 %v1886_v18  ;;  %v1896_v39 = vld [vmem:[#allocation11 + $0x88] sm:$0xff] }
 0x227   :  { %v1274_v47 = vpop.f32.mrf.mxu0  ;;  %v1280_v48 = vmax.f32 %v1269_v44, 0.0  ;;  %v1198_v49 = vadd.f32 %v1197_v46, %v1121_v27  ;;  %v2541_v53 = vadd.f32 %v1272_v1, %v1196_v45  ;;  %v1885_v22 = vld [vmem:[#allocation11 + $0x30] sm:$0xff]  ;;  %v1900_v27 = vld [vmem:[#allocation11 + $0xa8] sm:$0xff]  ;;  %2145 = vmatprep.subr.mxu0 %v1901_v24 }
 0x228   :  { %v1424_v1 = vld [vmem:[#allocation8 + $0x458] sm:$0xff]  ;;  %v1423_v44 = vld [vmem:[#allocation8 + $0x450] sm:$0xff]  ;;  %2146 = vmatpush3.msra.mxu0 %v1885_v22 }
 0x229   :  { %v2543_v55 = vadd.f32 %v1274_v47, %v1198_v49  ;;  %1704 = vmatprep.mubr.f32.mxu1 %v1280_v48  ;;  %v1283_v60 = vmax.f32 %v2541_v53, 0.0  ;;  %v1884_v45 = vld [vmem:[#allocation11 + $0x28] sm:$0xff]  ;;  %v1420_v46 = vld [vmem:[#allocation8 + $0x438] sm:$0xff]  ;;  %v1899_v47 = vld [vmem:[#allocation11 + $0xa0] sm:$0xff]  ;;  %2147 = vmatprep.subr.mxu0 %v1900_v27 }
 0x22a   :  { %1705 = vmatmul.mubr.f32.vlgmr.msra.gmra.mxu1 %v1279_v51  ;;  %v1883_v49 = vld [vmem:[#allocation11 + $0x20] sm:$0xff]  ;;  %2148 = vmatpush3.msra.mxu0 %v1884_v45  ;;  %v1941_v18 = vld [vmem:[#allocation11 + $0x1f0] sm:$0xff]  ;;  %v1940_v24 = vld [vmem:[#allocation11 + $0x1e8] sm:$0xff] }
 0x22b   :  { %v1284_v58 = vmax.f32 %v2543_v55, 0.0  ;;  %1795 = vmatpush1.msra.mxu1 %v1475_v54  ;;  %v1416_v54 = vld [vmem:[#allocation8 + $0x418] sm:$0xff]  ;;  %2149 = vmatprep.subr.mxu0 %v1899_v47  ;;  %v1939_v53 = vld [vmem:[#allocation11 + $0x1e0] sm:$0xff]  ;;  %v1936_v45 = vld [vmem:[#allocation11 + $0x1c8] sm:$0xff] }
 0x22c   :  { %1796 = vmatprep.subr.mxu1 %v1472_v56  ;;  %v1415_v56 = vld [vmem:[#allocation8 + $0x410] sm:$0xff]  ;;  %2150 = vmatpush3.msra.mxu0 %v1883_v49  ;;  %v1942_v55 = vld [vmem:[#allocation11 + $0x1f8] sm:$0xff]  ;;  %v1935_v47 = vld [vmem:[#allocation11 + $0x1c0] sm:$0xff] }
 0x22d   :  { %1797 = vmatpush1.msra.mxu1 %v1471_v57  ;;  %1710 = vmatprep.mubr.f32.mxu1 %v1284_v58  ;;  %v1540_v57 = vld [vmem:[#allocation8 + $0x7f8] sm:$0xff] }
 0x22e   :  { %1798 = vmatprep.subr.mxu1 %v1468_v59  ;;  %1711 = vmatmul.mubr.f32.gmra.mxu1 %v1283_v60  ;;  %v1539_v59 = vld [vmem:[#allocation8 + $0x7f0] sm:$0xff]  ;;  %v1938_v22 = vld [vmem:[#allocation11 + $0x1d8] sm:$0xff] }
 0x22f   :  { %1799 = vmatpush1.msra.mxu1 %v1467_v61  ;;  %1858 = vmatprep.mubr.f32.mxu1 %v1280_v48  ;;  %v1419_v48 = vld [vmem:[#allocation8 + $0x430] sm:$0xff]  ;;  %v1536_v61 = vld [vmem:[#allocation8 + $0x7d8] sm:$0xff] }
 0x230   :  { %1800 = vmatprep.subr.mxu1 %v1464_v0  ;;  %v1535_v0 = vld [vmem:[#allocation8 + $0x7d0] sm:$0xff]  ;;  %2151 = vmatprep.subr.mxu0 %v1898_v35  ;;  %v1934_v49 = vld [vmem:[#allocation11 + $0x1b8] sm:$0xff] }
 0x231   :  { %1801 = vmatpush1.msra.mxu1 %v1463_v2  ;;  %v1532_v2 = vld [vmem:[#allocation8 + $0x7b8] sm:$0xff] }
 0x232   :  { %1802 = vmatprep.subr.mxu1 %v1460_v3  ;;  %v1531_v3 = vld [vmem:[#allocation8 + $0x7b0] sm:$0xff] }
 0x233   :  { %1803 = vmatpush1.msra.mxu1 %v1459_v8  ;;  %v1523_v8 = vld [vmem:[#allocation8 + $0x770] sm:$0xff] }
 0x234   :  { %1804 = vmatprep.subr.mxu1 %v1456_v11  ;;  %v1519_v11 = vld [vmem:[#allocation8 + $0x750] sm:$0xff] }
 0x235   :  { %1805 = vmatpush1.msra.mxu1 %v1455_v14  ;;  %v1515_v14 = vld [vmem:[#allocation8 + $0x730] sm:$0xff] }
 0x236   :  { %1806 = vmatprep.subr.mxu1 %v1452_v17  ;;  %v1511_v17 = vld [vmem:[#allocation8 + $0x710] sm:$0xff] }
 0x237   :  { %1807 = vmatpush1.msra.mxu1 %v1451_v21  ;;  %v1507_v21 = vld [vmem:[#allocation8 + $0x6f0] sm:$0xff] }
 0x238   :  { %1808 = vmatprep.subr.mxu1 %v1448_v25  ;;  %v1503_v25 = vld [vmem:[#allocation8 + $0x6d0] sm:$0xff] }
 0x239   :  { %1809 = vmatpush1.msra.mxu1 %v1447_v30  ;;  %v1499_v30 = vld [vmem:[#allocation8 + $0x6b0] sm:$0xff] }
 0x23a   :  { %1810 = vmatprep.subr.mxu1 %v1444_v32  ;;  %v1495_v32 = vld [vmem:[#allocation8 + $0x690] sm:$0xff] }
 0x23b   :  { %1811 = vmatpush1.msra.mxu1 %v1443_v63  ;;  %v1491_v63 = vld [vmem:[#allocation8 + $0x670] sm:$0xff] }
 0x23c   :  { %1812 = vmatprep.subr.mxu1 %v1440_v9  ;;  %v1487_v9 = vld [vmem:[#allocation8 + $0x650] sm:$0xff] }
 0x23d   :  { %1813 = vmatpush1.msra.mxu1 %v1439_v19  ;;  %v1483_v19 = vld [vmem:[#allocation8 + $0x630] sm:$0xff] }
 0x23e   :  { %1814 = vmatprep.subr.mxu1 %v1436_v34  ;;  %v1479_v34 = vld [vmem:[#allocation8 + $0x610] sm:$0xff] }
 0x23f   :  { %1815 = vmatpush1.msra.mxu1 %v1435_v36  ;;  %v1882_v36 = vld [vmem:[#allocation11 + $0x18] sm:$0xff]  ;;  %v1937_v27 = vld [vmem:[#allocation11 + $0x1d0] sm:$0xff] }
 0x240   :  { %1816 = vmatprep.subr.mxu1 %v1432_v38  ;;  %2152 = vmatpush3.msra.mxu0 %v1882_v36  ;;  %v1881_v38 = vld [vmem:[#allocation11 + $0x10] sm:$0xff] }
 0x241   :  { %1817 = vmatpush1.msra.mxu1 %v1431_v40  ;;  %2153 = vmatprep.subr.mxu0 %v1897_v37  ;;  %v1880_v40 = vld [vmem:[#allocation11 + $0x8] sm:$0xff] }
 0x242   :  { %1818 = vmatprep.subr.mxu1 %v1428_v41  ;;  %2154 = vmatpush3.msra.mxu0 %v1881_v38  ;;  %v1925_v41 = vld [vmem:[#allocation11 + $0x170] sm:$0xff] }
 0x243   :  { %1819 = vmatpush1.msra.mxu1 %v1427_v42  ;;  %2155 = vmatprep.subr.mxu0 %v1896_v39  ;;  %v1924_v42 = vld [vmem:[#allocation11 + $0x168] sm:$0xff] }
 0x244   :  { %1820 = vmatprep.subr.mxu1 %v1424_v1  ;;  %2156 = vmatpush3.msra.mxu0 %v1880_v40  ;;  %v1922_v1 = vld [vmem:[#allocation11 + $0x158] sm:$0xff] }
 0x245   :  { %1821 = vmatpush1.msra.mxu1 %v1423_v44  ;;  %2157 = vmatprep.subr.mxu0 %v1895_v43  ;;  %v1921_v44 = vld [vmem:[#allocation11 + $0x150] sm:$0xff] }
 0x246   :  { %1822 = vmatprep.subr.mxu1 %v1420_v46  ;;  %v1920_v46 = vld [vmem:[#allocation11 + $0x148] sm:$0xff] }
 0x247   :  { %1823 = vmatpush1.msra.mxu1 %v1419_v48  ;;  %v1919_v48 = vld [vmem:[#allocation11 + $0x140] sm:$0xff] }
 0x248   :  { %1824 = vmatprep.subr.mxu1 %v1416_v54  ;;  %v1918_v54 = vld [vmem:[#allocation11 + $0x138] sm:$0xff] }
 0x249   :  { %1825 = vmatpush1.msra.mxu1 %v1415_v56  ;;  %v1933_v56 = vld [vmem:[#allocation11 + $0x1b0] sm:$0xff] }
 0x24a   :  { %1826 = vmatprep.subr.mxu1 %v1540_v57  ;;  %v1917_v57 = vld [vmem:[#allocation11 + $0x130] sm:$0xff] }
 0x24b   :  { %1827 = vmatpush2.msra.mxu1 %v1539_v59  ;;  %v1932_v59 = vld [vmem:[#allocation11 + $0x1a8] sm:$0xff] }
 0x24c   :  { %1828 = vmatprep.subr.mxu1 %v1536_v61  ;;  %v1916_v61 = vld [vmem:[#allocation11 + $0x128] sm:$0xff] }
 0x24d   :  { %1829 = vmatpush2.msra.mxu1 %v1535_v0  ;;  %v1931_v0 = vld [vmem:[#allocation11 + $0x1a0] sm:$0xff] }
 0x24e   :  { %1830 = vmatprep.subr.mxu1 %v1532_v2  ;;  %v1915_v2 = vld [vmem:[#allocation11 + $0x120] sm:$0xff] }
 0x24f   :  { %1831 = vmatpush2.msra.mxu1 %v1531_v3  ;;  %v1930_v3 = vld [vmem:[#allocation11 + $0x198] sm:$0xff] }
 0x250   :  { %1832 = vmatprep.subr.mxu1 %v1528_v4  ;;  %v1914_v4 = vld [vmem:[#allocation11 + $0x118] sm:$0xff] }
 0x251   :  { %1833 = vmatpush2.msra.mxu1 %v1527_v6  ;;  %v1929_v6 = vld [vmem:[#allocation11 + $0x190] sm:$0xff] }
 0x252   :  { %1834 = vmatprep.subr.mxu1 %v1524_v7  ;;  %v1913_v7 = vld [vmem:[#allocation11 + $0x110] sm:$0xff] }
 0x253   :  { %1835 = vmatpush2.msra.mxu1 %v1523_v8  ;;  %v1928_v8 = vld [vmem:[#allocation11 + $0x188] sm:$0xff] }
 0x254   :  { %1836 = vmatprep.subr.mxu1 %v1520_v10  ;;  %v1912_v10 = vld [vmem:[#allocation11 + $0x108] sm:$0xff] }
 0x255   :  { %1837 = vmatpush2.msra.mxu1 %v1519_v11  ;;  %v1927_v11 = vld [vmem:[#allocation11 + $0x180] sm:$0xff] }
 0x256   :  { %1838 = vmatprep.subr.mxu1 %v1516_v12  ;;  %v1911_v12 = vld [vmem:[#allocation11 + $0x100] sm:$0xff] }
 0x257   :  { %1839 = vmatpush2.msra.mxu1 %v1515_v14 }
 0x258   :  { %1840 = vmatprep.subr.mxu1 %v1512_v15  ;;  %v1541_v15 = vld [vmem:[#allocation10] sm:$0xf] }
 0x259   :  { %1841 = vmatpush2.msra.mxu1 %v1511_v17  ;;  %v1554_v39 = vrot.slane %v1541_v15, %v644_v26  ;;  %v1558_v40 = vrot.slane %v1541_v15, %v648_v29 }
 0x25a   :  { %1842 = vmatprep.subr.mxu1 %v1508_v20  ;;  %v1546_v20 = vrot.slane %v1541_v15, %v636_v62 }
 0x25b   :  { %1843 = vmatpush2.msra.mxu1 %v1507_v21  ;;  %v1550_v21 = vrot.slane %v1541_v15, %v640_v5 }
 0x25c   :  { %1844 = vmatprep.subr.mxu1 %v1504_v23 }
 0x25d   :  { %1845 = vmatpush2.msra.mxu1 %v1503_v25 }
 0x25e   :  { %1846 = vmatprep.subr.mxu1 %v1500_v28 }
 0x25f   :  { %1847 = vmatpush2.msra.mxu1 %v1499_v30 }
 0x260   :  { %1848 = vmatprep.subr.mxu1 %v1496_v31 }
 0x261   :  { %1849 = vmatpush2.msra.mxu1 %v1495_v32 }
 0x262   :  { %1850 = vmatprep.subr.mxu1 %v1492_v50 }
 0x263   :  { %1851 = vmatpush2.msra.mxu1 %v1491_v63 }
 0x264   :  { %1852 = vmatprep.subr.mxu1 %v1488_v13 }
 0x265   :  { %1853 = vmatpush2.msra.mxu1 %v1487_v9 }
 0x266   :  { %1854 = vmatprep.subr.mxu1 %v1484_v16 }
 0x267   :  { %1855 = vmatpush2.msra.mxu1 %v1483_v19 }
 0x268   :  { %1856 = vmatprep.subr.mxu1 %v1480_v33 }
 0x269   :  { %1857 = vmatpush2.msra.mxu1 %v1479_v34  ;;  %v1629_v14 = vpop.f32.mrf.mxu0 }
 0x26a   :  { %1859 = vmatmul.mubr.f32.vlgmr.msra.gmra.mxu1 %v1279_v51  ;;  %v1879_v51 = vld [vmem:[#allocation11] sm:$0xff]  ;;  %2165 = vmatprep.subr.mxu1 %v1942_v55  ;;  %v1630_v25 = vadd.f32 %v1629_v14, %v1546_v20 }
 0x26b   :  { %1864 = vmatprep.mubr.f32.mxu1 %v1284_v58  ;;  %2158 = vmatpush3.msra.mxu0 %v1879_v51  ;;  %v1926_v58 = vld [vmem:[#allocation11 + $0x178] sm:$0xff]  ;;  %v1631_v17 = vpop.f32.mrf.mxu0 }
 0x26c   :  { %2166 = vmatpush3.msra.mxu1 %v1926_v58  ;;  %v1632_v30 = vadd.f32 %v1631_v17, %v1550_v21 }
 0x26d   :  { %2167 = vmatprep.subr.mxu1 %v1941_v18 }
 0x26e   :  { %1865 = vmatmul.mubr.f32.gmra.mxu1 %v1283_v60  ;;  %v1923_v60 = vld [vmem:[#allocation11 + $0x160] sm:$0xff] }
 0x26f   :  { %2168 = vmatpush3.msra.mxu1 %v1925_v41  ;;  %v1635_v23 = vpop.f32.mrf.mxu0 }
 0x270   :  { %2169 = vmatprep.subr.mxu1 %v1940_v24  ;;  %v1636_v13 = vadd.f32 %v1635_v23, %v1546_v20 }
 0x271   :  { %2170 = vmatpush3.msra.mxu1 %v1924_v42  ;;  %v1637_v31 = vpop.f32.mrf.mxu0 }
 0x272   :  { %2171 = vmatprep.subr.mxu1 %v1939_v53  ;;  %v1638_v16 = vadd.f32 %v1637_v31, %v1550_v21 }
 0x273   :  { %2172 = vmatpush3.msra.mxu1 %v1923_v60 }
 0x274   :  { %2173 = vmatprep.subr.mxu1 %v1938_v22 }
 0x275   :  { %2174 = vmatpush3.msra.mxu1 %v1922_v1 }
 0x276   :  { %2175 = vmatprep.subr.mxu1 %v1937_v27 }
 0x277   :  { %2176 = vmatpush3.msra.mxu1 %v1921_v44 }
 0x278   :  { %2177 = vmatprep.subr.mxu1 %v1936_v45 }
 0x279   :  { %2178 = vmatpush3.msra.mxu1 %v1920_v46 }
 0x27a   :  { %2179 = vmatprep.subr.mxu1 %v1935_v47 }
 0x27b   :  { %2180 = vmatpush3.msra.mxu1 %v1919_v48 }
 0x27c   :  { %2181 = vmatprep.subr.mxu1 %v1934_v49 }
 0x27d   :  { %2182 = vmatpush3.msra.mxu1 %v1918_v54  ;;  %v2126_v54 = vld [vmem:[#allocation13] ss:$0 sm:$0xff] }
 0x27e   :  { %2183 = vmatprep.subr.mxu1 %v1933_v56 }
 0x27f   :  { %2184 = vmatpush3.msra.mxu1 %v1917_v57 }
 0x280   :  { %2185 = vmatprep.subr.mxu1 %v1932_v59 }
 0x281   :  { %2186 = vmatpush3.msra.mxu1 %v1916_v61 }
 0x282   :  { %2187 = vmatprep.subr.mxu1 %v1931_v0 }
 0x283   :  { %2188 = vmatpush3.msra.mxu1 %v1915_v2 }
 0x284   :  { %2189 = vmatprep.subr.mxu1 %v1930_v3 }
 0x285   :  { %2190 = vmatpush3.msra.mxu1 %v1914_v4 }
 0x286   :  { %2191 = vmatprep.subr.mxu1 %v1929_v6 }
 0x287   :  { %2192 = vmatpush3.msra.mxu1 %v1913_v7 }
 0x288   :  { %2193 = vmatprep.subr.mxu1 %v1928_v8 }
 0x289   :  { %2194 = vmatpush3.msra.mxu1 %v1912_v10 }
 0x28a   :  { %2195 = vmatprep.subr.mxu1 %v1927_v11 }
 0x28b   :  { %2196 = vmatpush3.msra.mxu1 %v1911_v12 }
 0x2a9   :  { %v1783_v37 = vpop.f32.mrf.mxu0 }
 0x2aa   :  { %v1784_v51 = vadd.f32 %v1783_v37, %v1554_v39 }
 0x2ab   :  { %v1785_v38 = vpop.f32.mrf.mxu0 }
 0x2ac   :  { %v1786_v58 = vadd.f32 %v1785_v38, %v1558_v40 }
 0x2ad   :  { %v1789_v43 = vpop.f32.mrf.mxu0 }
 0x2ae   :  { %v1790_v53 = vadd.f32 %v1789_v43, %v1554_v39 }
 0x2af   :  { %v1791_v18 = vpop.f32.mrf.mxu0 }
 0x2b0   :  { %v1792_v22 = vadd.f32 %v1791_v18, %v1558_v40 }
 0x2ea   :  { %v1706_v28 = vpop.f32.mrf.mxu1 }
 0x2eb   :  { %v1707_v32 = vadd.f32 %v1706_v28, %v1630_v25 }
 0x2ec   :  { %v1708_v50 = vpop.f32.mrf.mxu1 }
 0x2ed   :  { %v1709_v63 = vadd.f32 %v1708_v50, %v1632_v30  ;;  %v1871_v33 = vmax.f32 %v1707_v32, 0.0 }
 0x2ee   :  { %v1712_v9 = vpop.f32.mrf.mxu1 }
 0x2ef   :  { %v1872_v19 = vmax.f32 %v1709_v63, 0.0  ;;  %v1713_v34 = vadd.f32 %v1712_v9, %v1636_v13 }
 0x2f0   :  { %v1714_v35 = vpop.f32.mrf.mxu1 }
 0x2f1   :  { %v1715_v36 = vadd.f32 %v1714_v35, %v1638_v16  ;;  %2014 = vmatprep.mubr.f32.mxu0 %v1872_v19  ;;  %v1875_v5 = vmax.f32 %v1713_v34, 0.0 }
 0x2f2   :  { %2015 = vmatmul.mubr.f32.vlgmr.msra.gmra.mxu0 %v1871_v33 }
 0x2f3   :  { %v1876_v62 = vmax.f32 %v1715_v36, 0.0 }
 0x2f5   :  { %2019 = vmatprep.mubr.f32.mxu0 %v1876_v62 }
 0x2f6   :  { %2020 = vmatmul.mubr.f32.gmra.mxu0 %v1875_v5 }
 0x32a   :  { %v1860_v55 = vpop.f32.mrf.mxu1 }
 0x32b   :  { %v1861_v41 = vadd.f32 %v1860_v55, %v1784_v51 }
 0x32c   :  { %v1862_v24 = vpop.f32.mrf.mxu1 }
 0x32d   :  { %v1863_v42 = vadd.f32 %v1862_v24, %v1786_v58  ;;  %v1873_v27 = vmax.f32 %v1861_v41, 0.0 }
 0x32e   :  { %v1866_v60 = vpop.f32.mrf.mxu1 }
 0x32f   :  { %v1874_v1 = vmax.f32 %v1863_v42, 0.0  ;;  %v1867_v44 = vadd.f32 %v1866_v60, %v1790_v53 }
 0x330   :  { %v1868_v45 = vpop.f32.mrf.mxu1 }
 0x331   :  { %v1869_v46 = vadd.f32 %v1868_v45, %v1792_v22  ;;  %2089 = vmatprep.mubr.f32.mxu1 %v1874_v1  ;;  %v1877_v26 = vmax.f32 %v1867_v44, 0.0 }
 0x332   :  { %2090 = vmatmul.mubr.f32.vlgmr.msra.gmra.mxu1 %v1873_v27 }
 0x333   :  { %v1878_v52 = vmax.f32 %v1869_v46, 0.0 }
 0x335   :  { %2094 = vmatprep.mubr.f32.mxu1 %v1878_v52 }
 0x336   :  { %2095 = vmatmul.mubr.f32.gmra.mxu1 %v1877_v26 }
 0x3b2   :  { %v2159_v29 = vpop.f32.mrf.mxu0 }
 0x3b4   :  { %v2160_v47 = vpop.f32.mrf.mxu0 }
 0x3b5   :  { %v2161_v49 = vadd.f32 %v2160_v47, %v2159_v29 }
 0x3b6   :  { %v2162_v48 = vpop.f32.mrf.mxu0 }
 0x3b7   :  { %v2017_v61 = vadd.f32 %v2161_v49, %v2126_v54 }
 0x3b8   :  { %v2163_v56 = vpop.f32.mrf.mxu0 }
 0x3b9   :  { %v2164_v0 = vadd.f32 %v2163_v56, %v2162_v48 }
 0x3bb   :  { %v2022_v7 = vadd.f32 %v2164_v0, %v2126_v54 }
 0x3f2   :  { %v2197_v57 = vpop.f32.mrf.mxu1 }
 0x3f4   :  { %v2198_v59 = vpop.f32.mrf.mxu1 }
 0x3f5   :  { %v2199_v2 = vadd.f32 %v2198_v59, %v2197_v57 }
 0x3f6   :  { %v2200_v3 = vpop.f32.mrf.mxu1 }
 0x3f7   :  { %v2092_v4 = vadd.f32 %v2199_v2, %v2017_v61 }
 0x3f8   :  { %v2201_v6 = vpop.f32.mrf.mxu1 }
 0x3f9   :  { %2100 = vst [vmem:[#allocation14] sm:$0xff] %v2092_v4  ;;  %v2202_v8 = vadd.f32 %v2201_v6, %v2200_v3 }
 0x3fb   :  { %v2097_v10 = vadd.f32 %v2202_v8, %v2022_v7 }
 0x3fd   :  { %2101 = vst [vmem:[#allocation14 + $0x8] sm:$0xff] %v2097_v10 }
 0x3fe   :  { %2380 = shalt.err (!%p2377_p11)
}
 0x3ff   :  { %2113 = dma.vmem_to_hbm [thread:$0]  %s2108_s6, 256, %s2580_s7, [#allocation4], %s2404_s1, %s2404_s1, %s2405_s16  }
 0x400   :  { %2397 = dma.done.wait [#allocation4], 256  }
 0x401   :  { %2398 = vsyncadd [#allocation4], 4294967040 }
 0x402   :  { %2117 = vsyncpa [#allocation3], 1 }
 0x403   :  { %2118 = vsyncpa [#allocation6], 1 }
 0x404   :  { %2119 = vsyncpa [#allocation9], 1 }
 0x405   :  { %2120 = vsyncpa [#allocation12], 1 }
 0x406   :  { %2121 = vsyncpa [#allocation4], 1 }

</bundles_post_ra>
